<compile_context>
chip_gen: v7x
topology: tpu7x:2x2x1
jax: 0.10.0
libtpu: 0.0.40
codegen_flags: <defaults>
</compile_context>

<pallas_src>
import jax
import jax.numpy as jnp
from jax.experimental import pallas as pl
from jax.experimental.pallas import tpu as pltpu


# --------------------------------------------------------------------------
# Kernel: one (batch, query-tile) grid step.
#   x_ref    : (C, N)     f32 input feature map, N = H*W on the lane axis
#   w_ref    : (2d+C, C)  f32 fused Wq|Wk|Wv 1x1-conv weights (d = C // 8)
#   b_ref    : (2d+C, 1)  f32 fused biases
#   gamma    : (1,)       f32 in SMEM
#   out_ref  : (C, TQ)    f32 output block for this query tile
#   qT_s/k_s/vT_s : per-batch persistent VMEM scratches (bf16)
# --------------------------------------------------------------------------
def attention_block_kernel(x_ref, w_ref, b_ref, gamma_ref, out_ref,
                           qT_s, k_s, vT_s):
    qi = pl.program_id(1)
    C = x_ref.shape[0]
    d = (w_ref.shape[0] - C) // 2                    # = C // 8
    TQ = out_ref.shape[1]

    # ---- hoisted per-batch QKV projection (first query tile of each batch)
    @pl.when(qi == 0)
    def _():
        x_bf = x_ref[...].astype(jnp.bfloat16)
        w_bf = w_ref[...].astype(jnp.bfloat16)
        qkv = jnp.dot(w_bf, x_bf,
                      preferred_element_type=jnp.float32) + b_ref[...]
        k_s[...] = qkv[d:2 * d, :].astype(jnp.bfloat16)          # (d, N)
        qT_s[...] = qkv[:d, :].T.astype(jnp.bfloat16)            # (N, d)
        vT_s[...] = qkv[2 * d:, :].T.astype(jnp.bfloat16)        # (N, C)

    # ---- per query-tile attention
    start = pl.multiple_of(qi * TQ, TQ)
    q_t = qT_s[pl.ds(start, TQ), :]                              # (TQ, d) bf16

    # scores[i, j] = sum_d q[d, i] * k[d, j]   (== torch.bmm(query, key))
    scores = jnp.dot(q_t, k_s[...],
                     preferred_element_type=jnp.float32)         # (TQ, N) f32
    # NOTE: no 1/sqrt(d_k) scaling -- the PyTorch reference has none.

    # explicit softmax over the full (resident) key axis, f32 max/exp/sum
    m = jnp.max(scores, axis=-1, keepdims=True)                  # (TQ, 1)
    p = jnp.exp(scores - m)                                      # (TQ, N) f32
    # TODO(synk): on v6e/v7x a bf16 exp roughly doubles EUP throughput; kept
    # f32 here so the identical kernel is also correct on v5e (no bf16 EUP).
    l = jnp.sum(p, axis=-1, keepdims=True)                       # (TQ, 1)

    # out[c, i] = sum_j v[c, j] * attn[i, j]  ==  (attn @ v^T)^T
    outT = jnp.dot(p.astype(jnp.bfloat16), vT_s[...],
                   preferred_element_type=jnp.float32)           # (TQ, C) f32
    outT = outT * pl.reciprocal(l, approx=True)                  # normalize
    out = outT.T                                                 # (C, TQ), small transpose

    x_blk = x_ref[:, pl.ds(start, TQ)]
    out_ref[...] = gamma_ref[0] * out + x_blk


# --------------------------------------------------------------------------
# Wrapper
# --------------------------------------------------------------------------
def attention_block(x, params, *, tq=128):
    """x: (B, C, H, W) float32 -> (B, C, H, W)."""
    B, C, Hs, Ws = x.shape
    assert C % 8 == 0, "in_channels must be a multiple of 8 (C // 8 proj dim)"
    N = Hs * Ws
    d = C // 8
    Dqkv = 2 * d + C

    # TODO(synk): for non-128-aligned H*W, pad the key axis and mask padded
    # columns with -inf scores; demo sizes already satisfy the invariant.
    assert N % 128 == 0, "H*W must be a multiple of 128"
    TQ = min(tq, N)
    assert TQ % 128 == 0 and N % TQ == 0

    x2 = x.reshape(B, C, N)          # contiguous view, free

    flops = int(B * (2 * Dqkv * C * N + 2 * d * N * N + 2 * C * N * N))
    bytes_accessed = int(4 * (2 * x2.size + params["w_qkv"].size
                              + params["b_qkv"].size + 1))
    cost = pl.CostEstimate(flops=flops,
                           transcendentals=int(B * N * N),
                           bytes_accessed=bytes_accessed)

    out = pl.pallas_call(
        attention_block_kernel,
        out_shape=jax.ShapeDtypeStruct((B, C, N), jnp.float32),
        grid=(B, N // TQ),
        in_specs=[
            pl.BlockSpec((None, C, N), lambda b, q: (b, 0, 0)),    # x (per batch)
            pl.BlockSpec((Dqkv, C), lambda b, q: (0, 0)),          # fused W_qkv
            pl.BlockSpec((Dqkv, 1), lambda b, q: (0, 0)),          # fused bias
            pl.BlockSpec(memory_space=pltpu.MemorySpace.SMEM),     # gamma scalar
        ],
        out_specs=pl.BlockSpec((None, C, TQ), lambda b, q: (b, 0, q)),
        scratch_shapes=[
            pltpu.VMEM((N, d), jnp.bfloat16),    # Q^T, persistent per batch
            pltpu.VMEM((d, N), jnp.bfloat16),    # K
            pltpu.VMEM((N, C), jnp.bfloat16),    # V^T
        ],
        compiler_params=pltpu.CompilerParams(
            dimension_semantics=("parallel", "arbitrary"),
            vmem_limit_bytes=48 * 1024 * 1024),
        cost_estimate=cost,
    )(x2, params["w_qkv"], params["b_qkv"], params["gamma"])

    return out.reshape(B, C, Hs, Ws)


# --------------------------------------------------------------------------
# Parameters (PyTorch Conv2d default init bounds; gamma is nn.Parameter(0.)
# in the reference -- we use a nonzero value in the demo so the attention
# path actually contributes to the checked output).
# --------------------------------------------------------------------------
def init_params(key, C):
    d = C // 8
    kq, kk, kv, kb = jax.random.split(key, 4)
    bound = 1.0 / (C ** 0.5)
    wq = jax.random.uniform(kq, (d, C), jnp.float32, -bound, bound)
    wk = jax.random.uniform(kk, (d, C), jnp.float32, -bound, bound)
    wv = jax.random.uniform(kv, (C, C), jnp.float32, -bound, bound)
    b = jax.random.uniform(kb, (2 * d + C, 1), jnp.float32, -bound, bound)
    return dict(
        w_qkv=jnp.concatenate([wq, wk, wv], axis=0),   # (2d + C, C)
        b_qkv=b,                                       # (2d + C, 1)
        gamma=jnp.array([1.0], jnp.float32),
    )


# Pure-JAX reference of the PyTorch forward, for an in-script sanity check.
def reference_attention_block(x, params):
    B, C, Hs, Ws = x.shape
    N = Hs * Ws
    d = C // 8
    w = params["w_qkv"]
    b = params["b_qkv"][:, 0]
    xf = x.reshape(B, C, N)
    qkv = jnp.einsum("oc,bcn->bon", w, xf) + b[None, :, None]
    q, k, v = qkv[:, :d], qkv[:, d:2 * d], qkv[:, 2 * d:]
    attn = jax.nn.softmax(jnp.einsum("bdi,bdj->bij", q, k), axis=-1)
    out = jnp.einsum("bcj,bij->bci", v, attn)
    return (params["gamma"][0] * out + xf).reshape(B, C, Hs, Ws)


if __name__ == "__main__":
    B, C, Hs, Ws = 2, 64, 16, 16          # in_channels=64 -> C // 8 = 8, N = 256

    key = jax.random.PRNGKey(0)
    kx, kp = jax.random.split(key)
    x = jax.random.normal(kx, (B, C, Hs, Ws), jnp.float32)
    params = init_params(kp, C)

    y = attention_block(x, params)
    jax.block_until_ready(y)

    assert y.shape == (B, C, Hs, Ws)
    y_ref = reference_attention_block(x, params)
    max_err = float(jnp.max(jnp.abs(y - y_ref)))
    # bf16 MXU operands + approx reciprocal -> loosened tolerance vs f32 ref.
    assert jnp.allclose(y, y_ref, rtol=1e-1, atol=1e-1), max_err
    print("KERNEL_OK")
</pallas_src>

<mosaic_0001>
module attributes {stable_mosaic.version = 11 : i64} {
  func.func @attention_block_kernel(%arg0: i32, %arg1: i32, %arg2: memref<1x64x256xf32, #tpu.memory_space<vmem>>, %arg3: memref<80x64xf32, #tpu.memory_space<vmem>>, %arg4: memref<80x1xf32, #tpu.memory_space<vmem>>, %arg5: memref<1xf32, #tpu.memory_space<smem>>, %arg6: memref<1x64x128xf32, #tpu.memory_space<vmem>>, %arg7: memref<256x8xbf16, #tpu.memory_space<vmem>>, %arg8: memref<8x256xbf16, #tpu.memory_space<vmem>>, %arg9: memref<256x64xbf16, #tpu.memory_space<vmem>>) attributes {dimension_semantics = [#tpu.dimension_semantics<parallel>, #tpu.dimension_semantics<arbitrary>], iteration_bounds = array<i64: 2, 2>, scalar_prefetch = 0 : i64, scratch_operands = 3 : i64, tpu.core_type = #tpu.core_type<tc>, window_params = [{transform_indices = @transform_0, window_bounds = array<i64: 1, 64, 256>}, {pipeline_mode = #tpu.pipeline_mode<synchronous>, transform_indices = @transform_1, window_bounds = array<i64: 80, 64>}, {pipeline_mode = #tpu.pipeline_mode<synchronous>, transform_indices = @transform_2, window_bounds = array<i64: 80, 1>}, {transform_indices = @transform_3, window_bounds = array<i64: 1>}, {transform_indices = @transform_4, window_bounds = array<i64: 1, 64, 128>}]} {
    %c0_i32 = arith.constant 0 : i32
    %0 = arith.cmpi eq, %arg1, %c0_i32 : i32
    %1 = arith.extui %0 : i1 to i32
    %c0_i32_0 = arith.constant 0 : i32
    %2 = arith.cmpi ne, %1, %c0_i32_0 : i32
    scf.if %2 {
      %c0_14 = arith.constant 0 : index
      %c0_15 = arith.constant 0 : index
      %c0_16 = arith.constant 0 : index
      %33 = vector.load %arg2[%c0_14, %c0_15, %c0_16] : memref<1x64x256xf32, #tpu.memory_space<vmem>>, vector<1x64x256xf32>
      %34 = vector.shape_cast %33 : vector<1x64x256xf32> to vector<64x256xf32>
      %35 = arith.truncf %34 : vector<64x256xf32> to vector<64x256xbf16>
      %c0_17 = arith.constant 0 : index
      %c0_18 = arith.constant 0 : index
      %36 = vector.load %arg3[%c0_17, %c0_18] : memref<80x64xf32, #tpu.memory_space<vmem>>, vector<80x64xf32>
      %37 = arith.truncf %36 : vector<80x64xf32> to vector<80x64xbf16>
      %cst_19 = arith.constant dense<0.000000e+00> : vector<80x256xf32>
      %38 = tpu.matmul %37, %35, %cst_19 {dimension_numbers = #tpu.dot_dimension_numbers<[1], [0], [0], [1], [0, 0, 1, 1], [], []>} : vector<80x64xbf16>, vector<64x256xbf16>, vector<80x256xf32> -> vector<80x256xf32>
      %c0_20 = arith.constant 0 : index
      %c0_21 = arith.constant 0 : index
      %39 = vector.load %arg4[%c0_20, %c0_21] : memref<80x1xf32, #tpu.memory_space<vmem>>, vector<80x1xf32>
      %40 = vector.broadcast %39 : vector<80x1xf32> to vector<80x256xf32>
      %41 = arith.addf %38, %40 : vector<80x256xf32>
      %42 = vector.extract_strided_slice %41 {offsets = [8, 0], sizes = [8, 256], strides = [1, 1]} : vector<80x256xf32> to vector<8x256xf32>
      %43 = arith.truncf %42 : vector<8x256xf32> to vector<8x256xbf16>
      %c0_22 = arith.constant 0 : index
      %c0_23 = arith.constant 0 : index
      %44 = vector.load %arg8[%c0_22, %c0_23] : memref<8x256xbf16, #tpu.memory_space<vmem>>, vector<8x256xbf16>
      tpu.vector_store %arg8[%c0_22, %c0_23], %43 {strides = array<i32>} : memref<8x256xbf16, #tpu.memory_space<vmem>>, vector<8x256xbf16>,
      %45 = vector.extract_strided_slice %41 {offsets = [0, 0], sizes = [8, 256], strides = [1, 1]} : vector<80x256xf32> to vector<8x256xf32>
      %46 = tpu.transpose %45, [1, 0] : vector<8x256xf32> -> vector<256x8xf32>
      %47 = arith.truncf %46 : vector<256x8xf32> to vector<256x8xbf16>
      %c0_24 = arith.constant 0 : index
      %c0_25 = arith.constant 0 : index
      %48 = vector.load %arg7[%c0_24, %c0_25] : memref<256x8xbf16, #tpu.memory_space<vmem>>, vector<256x8xbf16>
      tpu.vector_store %arg7[%c0_24, %c0_25], %47 {strides = array<i32>} : memref<256x8xbf16, #tpu.memory_space<vmem>>, vector<256x8xbf16>,
      %49 = vector.extract_strided_slice %41 {offsets = [16, 0], sizes = [64, 256], strides = [1, 1]} : vector<80x256xf32> to vector<64x256xf32>
      %50 = tpu.transpose %49, [1, 0] : vector<64x256xf32> -> vector<256x64xf32>
      %51 = arith.truncf %50 : vector<256x64xf32> to vector<256x64xbf16>
      %c0_26 = arith.constant 0 : index
      %c0_27 = arith.constant 0 : index
      %52 = vector.load %arg9[%c0_26, %c0_27] : memref<256x64xbf16, #tpu.memory_space<vmem>>, vector<256x64xbf16>
      tpu.vector_store %arg9[%c0_26, %c0_27], %51 {strides = array<i32>} : memref<256x64xbf16, #tpu.memory_space<vmem>>, vector<256x64xbf16>,
    } else {
    }
    %c128_i32 = arith.constant 128 : i32
    %3 = arith.muli %arg1, %c128_i32 : i32
    %4 = tpu.assume_multiple %3, 128 : i32
    %5 = arith.index_cast %4 : i32 to index
    %c0 = arith.constant 0 : index
    %6 = vector.load %arg7[%5, %c0] : memref<256x8xbf16, #tpu.memory_space<vmem>>, vector<128x8xbf16>
    %c0_1 = arith.constant 0 : index
    %c0_2 = arith.constant 0 : index
    %7 = vector.load %arg8[%c0_1, %c0_2] : memref<8x256xbf16, #tpu.memory_space<vmem>>, vector<8x256xbf16>
    %cst = arith.constant dense<0.000000e+00> : vector<128x256xf32>
    %8 = tpu.matmul %6, %7, %cst {dimension_numbers = #tpu.dot_dimension_numbers<[1], [0], [0], [1], [0, 0, 1, 1], [], []>} : vector<128x8xbf16>, vector<8x256xbf16>, vector<128x256xf32> -> vector<128x256xf32>
    %cst_3 = arith.constant dense<0xFF800000> : vector<128xf32>
    %9 = vector.multi_reduction <maximumf>, %8, %cst_3 [1] : vector<128x256xf32> to vector<128xf32>
    %10 = vector.shape_cast %9 : vector<128xf32> to vector<128x1xf32>
    %11 = vector.broadcast %10 : vector<128x1xf32> to vector<128x256xf32>
    %12 = arith.subf %8, %11 : vector<128x256xf32>
    %13 = math.exp %12 : vector<128x256xf32>
    %cst_4 = arith.constant dense<0.000000e+00> : vector<128xf32>
    %14 = vector.multi_reduction <add>, %13, %cst_4 [1] : vector<128x256xf32> to vector<128xf32>
    %15 = vector.shape_cast %14 : vector<128xf32> to vector<128x1xf32>
    %16 = arith.truncf %13 : vector<128x256xf32> to vector<128x256xbf16>
    %c0_5 = arith.constant 0 : index
    %c0_6 = arith.constant 0 : index
    %17 = vector.load %arg9[%c0_5, %c0_6] : memref<256x64xbf16, #tpu.memory_space<vmem>>, vector<256x64xbf16>
    %cst_7 = arith.constant dense<0.000000e+00> : vector<128x64xf32>
    %18 = tpu.matmul %16, %17, %cst_7 {dimension_numbers = #tpu.dot_dimension_numbers<[1], [0], [0], [1], [0, 0, 1, 1], [], []>} : vector<128x256xbf16>, vector<256x64xbf16>, vector<128x64xf32> -> vector<128x64xf32>
    %19 = tpu.reciprocal %15 {approx = true} : vector<128x1xf32> -> vector<128x1xf32>
    %20 = vector.broadcast %19 : vector<128x1xf32> to vector<128x64xf32>
    %21 = arith.mulf %18, %20 : vector<128x64xf32>
    %22 = tpu.transpose %21, [1, 0] : vector<128x64xf32> -> vector<64x128xf32>
    %c0_8 = arith.constant 0 : index
    %c0_9 = arith.constant 0 : index
    %23 = arith.index_cast %4 : i32 to index
    %24 = vector.load %arg2[%c0_8, %c0_9, %23] : memref<1x64x256xf32, #tpu.memory_space<vmem>>, vector<1x64x128xf32>
    %25 = vector.shape_cast %24 : vector<1x64x128xf32> to vector<64x128xf32>
    %c0_10 = arith.constant 0 : index
    %26 = memref.load %arg5[%c0_10] : memref<1xf32, #tpu.memory_space<smem>>
    %27 = vector.broadcast %26 : f32 to vector<64x128xf32>
    %28 = arith.mulf %27, %22 : vector<64x128xf32>
    %29 = arith.addf %28, %25 : vector<64x128xf32>
    %c0_11 = arith.constant 0 : index
    %c0_12 = arith.constant 0 : index
    %c0_13 = arith.constant 0 : index
    %30 = vector.load %arg6[%c0_11, %c0_12, %c0_13] : memref<1x64x128xf32, #tpu.memory_space<vmem>>, vector<1x64x128xf32>
    %31 = vector.shape_cast %30 : vector<1x64x128xf32> to vector<64x128xf32>
    %32 = vector.shape_cast %29 : vector<64x128xf32> to vector<1x64x128xf32>
    tpu.vector_store %arg6[%c0_11, %c0_12, %c0_13], %32 {strides = array<i32>} : memref<1x64x128xf32, #tpu.memory_space<vmem>>, vector<1x64x128xf32>,
    return
  }
  func.func @transform_0(%arg0: i32, %arg1: i32) -> (i32, i32, i32) {
    %c0_i32 = arith.constant 0 : i32
    %c0_i32_0 = arith.constant 0 : i32
    %c0_i32_1 = arith.constant 0 : i32
    return %arg0, %c0_i32, %c0_i32_0 : i32, i32, i32
  }
  func.func @transform_1(%arg0: i32, %arg1: i32) -> (i32, i32) {
    %c0_i32 = arith.constant 0 : i32
    %c0_i32_0 = arith.constant 0 : i32
    %c0_i32_1 = arith.constant 0 : i32
    return %c0_i32, %c0_i32_0 : i32, i32
  }
  func.func @transform_2(%arg0: i32, %arg1: i32) -> (i32, i32) {
    %c0_i32 = arith.constant 0 : i32
    %c0_i32_0 = arith.constant 0 : i32
    %c0_i32_1 = arith.constant 0 : i32
    return %c0_i32, %c0_i32_0 : i32, i32
  }
  func.func @transform_3(%arg0: i32, %arg1: i32) -> i32 {
    %c0_i32 = arith.constant 0 : i32
    %c0_i32_0 = arith.constant 0 : i32
    return %c0_i32 : i32
  }
  func.func @transform_4(%arg0: i32, %arg1: i32) -> (i32, i32, i32) {
    %c0_i32 = arith.constant 0 : i32
    %c0_i32_0 = arith.constant 0 : i32
    return %arg0, %c0_i32, %arg1 : i32, i32, i32
  }
}

</mosaic_0001>

<bundles_post_ra>
// kernel: tpu_custom_call.1
= control target key start
LH: loop header
LB: loop body
LE: loop exit
PB: predicated region body
PF: predicated region fallthrough
CT: control target
= control target key end

     0   :  { %s2563_s0 = inlined_call_operand.hbm [shape: f32[2,64,256], index: 0, kind: input, shape index: {}]   ;;  %s2564_s1 = inlined_call_operand.vmem [shape: f32[80,64], index: 1, kind: input, shape index: {}]   ;;  %s2565_s2 = inlined_call_operand.vmem [shape: f32[80,1], index: 2, kind: input, shape index: {}]   ;;  %s2566_s3 = inlined_call_operand.<no memory space> [shape: f32[1], index: 3, kind: input, shape index: {}]   ;;  %s2567_s4 = inlined_call_operand.hbm [shape: f32[2,64,256], index: 4, kind: output, shape index: {}]  }
   0x1   :  { %9 = sst [smem:[#allocation5]] %s2566_s3 }
   0x2   :  { %10 = vsyncpa [#allocation7], 0 }
   0x3   :  { %12 = vsyncpa [#allocation7 + $0x1], 0 }
   0x4   :  { %13 = vsyncpa [#allocation8], 0 }
   0x5   :  { %15 = vsyncpa [#allocation8 + $0x1], 0  ;;  %s2033_s17 = smov 0   ;;  %s2035_s18 = smov 0  }
   0x6   :  { %s2037_s19 = smov 0   ;;  %s2039_s20 = smov 0  }
   0x7   :  { %s2041_s21 = smov 0   ;;  %s2043_s22 = smov 0  }
   0x8   :  { %s2045_s23 = smov 0   ;;  %s2047_s24 = smov 0  }
   0x9   :  { %s2049_s3 = smov 0   ;;  %s2051_s25 = smov 0  }
   0xa   :  { %s2053_s26 = smov 0  }
   0xb LB: > { %s1328_s27 = sadd.s32 4294967295, %s1994_s26   ;;  %s1329_s28 = sadd.s32 4294967294, %s1994_s26   ;;  %s1994_s26 = sphi %s2053_s26, %s21_s26   ;;  %s1990_s25 = sphi %s2051_s25, %s2591_s25   ;;  %s1986_s3 = sphi %s2049_s3, %s2590_s3   ;;  %s1982_s24 = sphi %s2047_s24, %s2589_s24   ;;  %s1978_s23 = sphi %s2045_s23, %s2588_s23   ;;  %s1974_s22 = sphi %s2043_s22, %s2587_s22   ;;  %s1970_s21 = sphi %s2041_s21, %s2586_s21   ;;  %s1966_s20 = sphi %s2039_s20, %s2585_s20   ;;  %s1962_s19 = sphi %s2037_s19, %s2584_s19   ;;  %s1958_s18 = sphi %s2035_s18, %s2583_s18   ;;  %s1954_s17 = sphi %s2033_s17, %s2582_s17  }
   0xc   : > { %s30_s29 = sadd.s32 1, %s1986_s3  ;;  %s33_s30 = sadd.s32 1, %s1990_s25 }
   0xd   : > { %p31_p0 = scmp.ge.s32.totalorder %s30_s29, 2  ;;  %s40_s5 = sadd.s32 1, %s1974_s22 }
   0xe   : > { %p47_p1 = scmp.ne.s32.totalorder %s1974_s22, %s1970_s21  ;;  %p48_p2 = scmp.eq.s32.totalorder %s1994_s26, 0 }
   0xf   : > { %s2593_s29 = smov (%p31_p0, %s30_s29), 0  ;;  %s2595_s30 = smov (!%p31_p0, %s33_s30), %s1990_s25 }
  0x10   : > { %p2097_p3 = por %p48_p2, %p47_p1  ;;  %p53_p4 = scmp.ne.s32.totalorder %s1970_s21, %s1966_s20 }
  0x11   : > { %p35_p5 = scmp.ge.s32.totalorder %s2595_s30, 2  ;;  %p54_p6 = scmp.eq.s32.totalorder %s1328_s27, 0 }
  0x12   : > { %s127_s7 = ssub.s32 %s1986_s3, %s2593_s29  ;;  %s131_s8 = sadd.s32 1, %s1962_s19 }
  0x13   : > { %s2597_s30 = smov (%p35_p5, %s2595_s30), 0  ;;  %p2107_p7 = por %p54_p6, %p53_p4 }
  0x14   : > { %2572 = sst [smem:[#allocation12_spill]] %s2597_s30  ;;  %p141_p8 = scmp.ne.s32.totalorder %s1962_s19, %s1958_s18 }
  0x15   : > { %s37_s10 = ssub.s32 %s1990_s25, %s2597_s30  ;;  %p142_p9 = scmp.eq.s32.totalorder %s1328_s27, 3 }
  0x16   : > { %p38_p10 = scmp.eq.s32.totalorder %s37_s10, 0  ;;  %s128_s11 = sor.u32 %s127_s7, %s37_s10 }
  0x17   : > { %p129_p11 = scmp.eq.s32.totalorder %s128_s11, 0  ;;  %p2115_p12 = por %p142_p9, %p141_p8 }
  0x18   : > { %s2120_s13 = scalar_select %p38_p10, %s1974_s22, %s40_s5  }
  0x19   : > { %s2574_s12 = scalar_select %p2115_p12, 1, 0 }
  0x1a   : > { %s2123_s14 = scalar_select %p129_p11, %s1962_s19, %s131_s8  }
  0x1b   : > { %p147_p13 = scmp.ne.s32.totalorder %s1958_s18, %s1954_s17  ;;  %p148_p0 = scmp.eq.s32.totalorder %s1329_s28, 3 }
  0x1c   : > { %p1466_p1 = scmp.lt.s32.totalorder %s1994_s26, 4  ;;  %s177_s16 = sand.u32 1, %s1974_s22  }
  0x1d   : > { %p2128_p2 = por %p148_p0, %p147_p13  ;;  %s1332_s20 = sshll.u32 %s177_s16, 7 }
  0x1e   : > { %s1364_s27 = sshll.u32 %s1990_s25, 11  ;;  %s181_s5 = scalar_lea.vmem [#allocation6], %s1332_s20 }
  0x1f   : > { %s2575_s15 = scalar_select %p2128_p2, 1, 0 }
  0x20   : > { %s2137_s11 = scalar_lea.hbm %s2563_s0, %s1364_s27  ;;  %s188_s8 = sshll.u32 %s181_s5, 4  ;;  %s2139_s8 = int_to_ptr.vmem [resolvable:$true] %s188_s8 }
  0x21   : > { %p2143_p4 = pnand %p1466_p1, %p2097_p3  ;;  %s2148_s30 = scalar_lea.sflag [#allocation7], %s177_s16 }
  0x22   : > { %s1842_s27 = scalar_lea.hbm %s2137_s11, 2048  ;;  %s1847_s6 = scalar_lea.hbm %s2563_s0, 4096 }
  0x23   : > { %p1843_p6 = scmp.ne.s32.totalorder %s2137_s11, %s1842_s27  ;;  %p1844_p8 = pneg %p2143_p4 }
  0x24   : > { %p1848_p3 = scmp.lt.u32.totalorder %s2137_s11, %s2563_s0  ;;  %p1849_p11 = scmp.lt.u32.totalorder %s1847_s6, %s1842_s27 }
  0x25   : > { %p1845_p9 = pnand %p1844_p8, %p1843_p6  ;;  %p1851_p0 = scmp.lt.u32.totalorder %s1842_s27, %s2137_s11 }
  0x26   : > { %p1850_p13 = por %p1849_p11, %p1848_p3 }
  0x27   : > { %p1846_p10 = pneg %p1845_p9 }
  0x28   : > { %p1852_p1 = por %p1851_p0, %p1850_p13 }
  0x2a   : > { %p1853_p5 = pnand %p1852_p1, %p1846_p10 }
  0x2c   : > { %1856 = shalt.err (!%p1853_p5)
}
  0x2d   : > { %s1857_s16 = scalar_lea.vmem %s2139_s8, 2048  ;;  %s1996_s20 = smov [#allocation6]  }
  0x2e   : > { %p1858_p6 = scmp.ne.s32.totalorder %s2139_s8, %s1857_s16  ;;  %s1862_s7 = sshll.u32 %s1996_s20, 4  ;;  %s1863_s7 = int_to_ptr.vmem [resolvable:$false] %s1862_s7 }
  0x2f   : > { %s1864_s10 = scalar_lea.vmem %s1863_s7, 4096  ;;  %p1865_p12 = scmp.lt.s32.totalorder %s2139_s8, %s1863_s7 }
  0x30   : > { %p1860_p9 = pnand %p1858_p6, %p1844_p8  ;;  %p1866_p3 = scmp.lt.s32.totalorder %s1864_s10, %s1857_s16 }
  0x32   : > { %p1861_p2 = pneg %p1860_p9  ;;  %p1867_p11 = por %p1866_p3, %p1865_p12 }
  0x34   : > { %p1868_p13 = pnand %p1867_p11, %p1861_p2 }
  0x36   : > { %1871 = shalt.err (!%p1868_p13)
}
  0x37   : > { %s1997_s27 = smov 256   ;;  %s1998_s6 = smov 16  }
  0x38   : > { %1461 = dma.hbm_to_vmem [thread:$0]  (!%p2143_p4), %s2137_s11, 2048, %s2139_s8, %s2148_s30, %s1997_s27, %s1997_s27, %s1998_s6  }
  0x39   : > { %p196_p5 = scmp.lt.s32.totalorder %s1994_s26, 5  ;;  %p2577_p8 = scmp.ge.s32.totalorder %s1994_s26, 1 }
  0x3b   : > { %p197_p10 = pnand %p2577_p8, %p196_p5 }
  0x3c   : > { %s202_s5 = sand.u32 (!%p197_p10), 1, %s1970_s21  }
  0x3d   : > { %200 = sbr.rel (%p197_p10) target bundleno = 1315 (0x523), region = 36  ;;  %s1336_s16 = sshll.u32 (!%p197_p10), %s202_s5, 7 }
  0x3e   : > { %s203_s20 = scalar_lea.sflag (!%p197_p10), [#allocation7], %s202_s5  ;;  %s2180_s7 = scalar_lea.vmem (!%p197_p10), [#allocation6], %s1336_s16 }
  0x44   : > { %1945 = dma.done.wait (%p2107_p7), %s203_s20, 2048  }
  0x45   : > { %1947 = vsyncadd (%p2107_p7), %s203_s20, 4294965248  ;;  %s2570_s28 = sand.u32 1, %s1958_s18   ;;  %p1338_p12 = scmp.ne.s32.totalorder %s1978_s23, 0 }
  0x46   : > { %s1337_s30 = sshll.u32 %s2570_s28, 6  ;;  %v237_v0 = vld [vmem:[%s2180_s7 + $0x8] sm:$0xff] (!%p1338_p12)  ;;  %v239_v1 = vld [vmem:[%s2180_s7 + $0x18] sm:$0xff] (!%p1338_p12)  ;;  %v236_v2 = vld [vmem:[%s2180_s7] sm:$0xff] (!%p1338_p12)  ;;  %v1999_v7 = vmov (!%p1338_p12), 0   ;;  %vm335_vm0 = vcmask (!%p1338_p12), 523264  }
  0x47   : > { %s2189_s11 = scalar_lea.vmem [#allocation9], %s1337_s30  ;;  %235 = sbr.rel (%p1338_p12) target bundleno = 508 (0x1fc), region = 44  ;;  %v253_v3 = vpack.c.bf16 (!%p1338_p12), %v239_v1, %v237_v0  ;;  %v238_v4 = vld [vmem:[%s2180_s7 + $0x10] sm:$0xff] (!%p1338_p12)  ;;  %v241_v5 = vld [vmem:[%s2180_s7 + $0x28] sm:$0xff] (!%p1338_p12)  ;;  %v243_v6 = vld [vmem:[%s2180_s7 + $0x38] sm:$0xff] (!%p1338_p12)  ;;  %383 = vmatprep.mubr.bf16.mxu0 (!%p1338_p12), %v1999_v7  ;;  %413 = vmatprep.mubr.bf16.mxu1 (!%p1338_p12), %v1999_v7  ;;  %vm523_vm1 = vcmask (!%p1338_p12), 64512  }
  0x48   : > { %v252_v8 = vpack.c.bf16 (!%p1338_p12), %v238_v4, %v236_v2  ;;  %v255_v9 = vpack.c.bf16 (!%p1338_p12), %v243_v6, %v241_v5  ;;  %v240_v10 = vld [vmem:[%s2180_s7 + $0x20] sm:$0xff] (!%p1338_p12)  ;;  %v242_v11 = vld [vmem:[%s2180_s7 + $0x30] sm:$0xff] (!%p1338_p12)  ;;  %v245_v12 = vld [vmem:[%s2180_s7 + $0x48] sm:$0xff] (!%p1338_p12)  ;;  %1565 = vset.pattern.permute.xlu1 (!%p1338_p12), %v1999_v7  ;;  %1564 = vset.pattern.permute.xlu0 (!%p1338_p12), %v1999_v7 }
  0x49   : > { %351 = vmatprep.subr.bf16.mxu0 (!%p1338_p12), %v253_v3  ;;  %1430 = vmatprep.subr.bf16.mxu1 (!%p1338_p12), %v253_v3  ;;  %v247_v13 = vld [vmem:[%s2180_s7 + $0x58] sm:$0xff] (!%p1338_p12)  ;;  %v254_v14 = vpack.c.bf16 (!%p1338_p12), %v242_v11, %v240_v10  ;;  %v244_v16 = vld [vmem:[%s2180_s7 + $0x40] sm:$0xff] (!%p1338_p12)  ;;  %v246_v17 = vld [vmem:[%s2180_s7 + $0x50] sm:$0xff] (!%p1338_p12) }
  0x4a   : > { %352 = vmatpush1.bf16.msra.mxu0 (!%p1338_p12), %v252_v8  ;;  %1434 = vmatpush1.bf16.msra.mxu1 (!%p1338_p12), %v252_v8  ;;  %v257_v15 = vpack.c.bf16 (!%p1338_p12), %v247_v13, %v245_v12  ;;  %v249_v18 = vld [vmem:[%s2180_s7 + $0x68] sm:$0xff] (!%p1338_p12)  ;;  %v251_v19 = vld [vmem:[%s2180_s7 + $0x78] sm:$0xff] (!%p1338_p12)  ;;  %v256_v20 = vpack.c.bf16 (!%p1338_p12), %v246_v17, %v244_v16  ;;  %v248_v23 = vld [vmem:[%s2180_s7 + $0x60] sm:$0xff] (!%p1338_p12) }
  0x4b   : > { %353 = vmatprep.subr.bf16.mxu0 (!%p1338_p12), %v255_v9  ;;  %1431 = vmatprep.subr.bf16.mxu1 (!%p1338_p12), %v255_v9  ;;  %v277_v21 = vld [vmem:[%s2565_s2 + $0x10] sm:$0xff] (!%p1338_p12)  ;;  %v259_v22 = vpack.c.bf16 (!%p1338_p12), %v251_v19, %v249_v18  ;;  %v250_v24 = vld [vmem:[%s2180_s7 + $0x70] sm:$0xff] (!%p1338_p12)  ;;  %v275_v25 = vld [vmem:[%s2565_s2] sm:$0xff] (!%p1338_p12) }
  0x4c   : > { %297 = vperm.xlu1 (!%p1338_p12), %1565, %v277_v21   ;;  %287 = vperm.xlu0 (!%p1338_p12), %1564, %v275_v25   ;;  %v260_v26 = vld [vmem:[%s2564_s1] sm:$0xff] (!%p1338_p12)  ;;  %v278_v27 = vld [vmem:[%s2565_s2 + $0x18] sm:$0xff] (!%p1338_p12)  ;;  %v276_v28 = vld [vmem:[%s2565_s2 + $0x8] sm:$0xff] (!%p1338_p12)  ;;  %v258_v29 = vpack.c.bf16 (!%p1338_p12), %v250_v24, %v248_v23 }
  0x4d   : > { %v261_v30 = vld [vmem:[%s2564_s1 + $0x8] sm:$0xff] (!%p1338_p12)  ;;  %v266_v31 = vld [vmem:[%s2564_s1 + $0x30] sm:$0xff] (!%p1338_p12)  ;;  %v267_v32 = vld [vmem:[%s2564_s1 + $0x38] sm:$0xff] (!%p1338_p12) }
  0x4e   : > { %354 = vmatpush1.bf16.msra.mxu0 %v254_v14  ;;  %1435 = vmatpush1.bf16.msra.mxu1 %v254_v14  ;;  %v270_v33 = vpack.c.bf16 %v261_v30, %v260_v26  ;;  %v273_v34 = vpack.c.bf16 %v267_v32, %v266_v31  ;;  %v280_v35 = vld [vmem:[%s2565_s2 + $0x28] sm:$0xff]  ;;  %v279_v36 = vld [vmem:[%s2565_s2 + $0x20] sm:$0xff]  ;;  %v262_v37 = vld [vmem:[%s2564_s1 + $0x10] sm:$0xff] }
  0x4f   : > { %355 = vmatprep.subr.bf16.mxu0 %v257_v15  ;;  %1432 = vmatprep.subr.bf16.mxu1 %v257_v15  ;;  %v282_v38 = vld [vmem:[%s2565_s2 + $0x38] sm:$0xff]  ;;  %v281_v39 = vld [vmem:[%s2565_s2 + $0x30] sm:$0xff]  ;;  %v268_v41 = vld [vmem:[%s2564_s1 + $0x40] sm:$0xff] }
  0x50   : > { %302 = vperm.xlu1 %1565, %v278_v27   ;;  %292 = vperm.xlu0 %1564, %v276_v28   ;;  %v263_v40 = vld [vmem:[%s2564_s1 + $0x18] sm:$0xff]  ;;  %v269_v42 = vld [vmem:[%s2564_s1 + $0x48] sm:$0xff]  ;;  %v283_v46 = vld [vmem:[%s2565_s2 + $0x40] sm:$0xff] }
  0x51   : > { %v271_v43 = vpack.c.bf16 %v263_v40, %v262_v37  ;;  %v274_v44 = vpack.c.bf16 %v269_v42, %v268_v41  ;;  %v284_v45 = vld [vmem:[%s2565_s2 + $0x48] sm:$0xff]  ;;  %v264_v47 = vld [vmem:[%s2564_s1 + $0x20] sm:$0xff] }
  0x52   : > { %356 = vmatpush1.bf16.msra.mxu0 %v256_v20  ;;  %1436 = vmatpush1.bf16.msra.mxu1 %v256_v20  ;;  %v265_v48 = vld [vmem:[%s2564_s1 + $0x28] sm:$0xff] }
  0x53   : > { %357 = vmatprep.subr.bf16.mxu0 %v259_v22  ;;  %1433 = vmatprep.subr.bf16.mxu1 %v259_v22  ;;  %v272_v49 = vpack.c.bf16 %v265_v48, %v264_v47 }
  0x54   : > { %312 = vperm.xlu1 %1565, %v280_v35   ;;  %307 = vperm.xlu0 %1564, %v279_v36  }
  0x56   : > { %358 = vmatpush1.bf16.msra.mxu0 %v258_v29  ;;  %1437 = vmatpush1.bf16.msra.mxu1 %v258_v29 }
  0x58   : > { %322 = vperm.xlu1 %1565, %v282_v38   ;;  %317 = vperm.xlu0 %1564, %v281_v39  }
  0x59   : > { %1339 = vmatmul.mubr.msk.bf16.vlgmr.msra.gmra.mrb[0].mxu0 %vm335_vm0, %v270_v33  ;;  %1342 = vmatmul.mubr.msk.bf16.vlgmr.msra.gmra.mrb[0].mxu1 %vm335_vm0, %v273_v34 }
  0x5a   : > { %393 = vmatprep.mubr.bf16.mxu0 %v1999_v7  ;;  %423 = vmatprep.mubr.bf16.mxu1 %v1999_v7 }
  0x5c   : > { %332 = vperm.xlu1 %1565, %v284_v45   ;;  %327 = vperm.xlu0 %1564, %v283_v46  }
  0x61   : > { %1340 = vmatmul.mubr.msk.bf16.gmra.mrb[4].mxu0 %vm335_vm0, %v271_v43  ;;  %1343 = vmatmul.mubr.msk.bf16.gmra.mrb[4].mxu1 %vm335_vm0, %v274_v44 }
  0x62   : > { %403 = vmatprep.mubr.bf16.mxu0 %v1999_v7 }
  0x69   : > { %1341 = vmatmul.mubr.msk.bf16.gmra.mrb[8].mxu0 %vm335_vm0, %v272_v49 }
  0xcb   : > { %v298_v50 = vpop.permute.xlu1 %297  ;;  %v288_v51 = vpop.permute.xlu0 %287 }
  0xcf   : > { %v303_v52 = vpop.permute.xlu1 %302  ;;  %v293_v53 = vpop.permute.xlu0 %292 }
  0xd3   : > { %v313_v54 = vpop.permute.xlu1 %312  ;;  %v308_v55 = vpop.permute.xlu0 %307 }
  0xd7   : > { %v323_v56 = vpop.permute.xlu1 %322  ;;  %v318_v57 = vpop.permute.xlu0 %317 }
  0xdb   : > { %v328_v14 = vpop.permute.xlu0 %327  ;;  %v333_v15 = vpop.permute.xlu1 %332 }
 0x12c   : > { %v385_v58 = vpop.f32.mrb[0].mxu0  ;;  %v415_v59 = vpop.f32.mrb[0].mxu1 }
 0x12d   : > { %v386_v60 = vadd.f32 %v385_v58, %v288_v51  ;;  %v387_v61 = vpop.f32.mrb[1].mxu0  ;;  %v416_v62 = vadd.f32 %v415_v59, %v318_v57  ;;  %v417_v63 = vpop.f32.mrb[1].mxu1 }
 0x12e   : > { %v388_v0 = vadd.f32 %v387_v61, %v288_v51  ;;  %v389_v1 = vpop.f32.mrb[2].mxu0  ;;  %v418_v2 = vadd.f32 %v417_v63, %v318_v57  ;;  %v419_v3 = vpop.f32.mrb[2].mxu1 }
 0x12f   : > { %v390_v4 = vadd.f32 %v389_v1, %v293_v53  ;;  %v391_v5 = vpop.f32.mrb[3].mxu0  ;;  %v420_v6 = vadd.f32 %v419_v3, %v323_v56  ;;  %v421_v7 = vpop.f32.mrb[3].mxu1 }
 0x130   : > { %v1566_v8 = vpack.i.bf16 %v388_v0, %v386_v60  ;;  %v392_v9 = vadd.f32 %v391_v5, %v293_v53  ;;  %v1656_v10 = vpack.i.bf16 %v418_v2, %v416_v62  ;;  %v422_v11 = vadd.f32 %v421_v7, %v323_v56 }
 0x132   : > { %v1365_v12 = vpack.c.bf16 %v392_v9, %v390_v4  ;;  %1567 = vxpose.xlu0.b32.start.end [1/1] (short) %v1566_v8, 128  ;;  %v1658_v13 = vpack.i.bf16 %v422_v11, %v420_v6 }
 0x134   : > { %442 = vst [vmem:[#allocation3] sm:$0xff] %v1365_v12  ;;  %v395_v16 = vpop.f32.mrb[4].mxu0  ;;  %v425_v17 = vpop.f32.mrb[4].mxu1 }
 0x135   : > { %v396_v18 = vadd.f32 %v395_v16, %v298_v50  ;;  %v426_v19 = vadd.f32 %v425_v17, %v328_v14  ;;  %v397_v20 = vpop.f32.mrb[5].mxu0  ;;  %v427_v21 = vpop.f32.mrb[5].mxu1 }
 0x136   : > { %v398_v22 = vadd.f32 %v397_v20, %v298_v50  ;;  %v428_v23 = vadd.f32 %v427_v21, %v328_v14  ;;  %v399_v24 = vpop.f32.mrb[6].mxu0  ;;  %v429_v25 = vpop.f32.mrb[6].mxu1 }
 0x137   : > { %v400_v26 = vadd.f32 %v399_v24, %v303_v52  ;;  %v430_v27 = vadd.f32 %v429_v25, %v333_v15  ;;  %v401_v28 = vpop.f32.mrb[7].mxu0  ;;  %v431_v29 = vpop.f32.mrb[7].mxu1 }
 0x138   : > { %v1648_v30 = vpack.i.bf16 %v398_v22, %v396_v18  ;;  %v1660_v31 = vpack.i.bf16 %v428_v23, %v426_v19  ;;  %v402_v32 = vadd.f32 %v401_v28, %v303_v52  ;;  %v432_v33 = vadd.f32 %v431_v29, %v333_v15 }
 0x13a   : > { %v1650_v34 = vpack.i.bf16 %v402_v32, %v400_v26  ;;  %v1662_v35 = vpack.i.bf16 %v432_v33, %v430_v27  ;;  %1649 = vxpose.xlu1.b32.start [1/8] (short) %v1648_v30, 128 }
 0x13c   : > { %v405_v36 = vpop.f32.mrb[8].mxu0 }
 0x13d   : > { %v406_v37 = vadd.f32 %v405_v36, %v308_v55  ;;  %v407_v38 = vpop.f32.mrb[9].mxu0 }
 0x13e   : > { %v408_v39 = vadd.f32 %v407_v38, %v308_v55  ;;  %v409_v40 = vpop.f32.mrb[10].mxu0  ;;  %1651 = vxpose.xlu1.b32.cont [2/8] (short) %v1650_v34, 128 }
 0x13f   : > { %v410_v41 = vadd.f32 %v409_v40, %v313_v54  ;;  %v411_v42 = vpop.f32.mrb[11].mxu0 }
 0x140   : > { %v1652_v43 = vpack.i.bf16 %v408_v39, %v406_v37  ;;  %v412_v44 = vadd.f32 %v411_v42, %v313_v54 }
 0x142   : > { %v1654_v45 = vpack.i.bf16 %v412_v44, %v410_v41  ;;  %1653 = vxpose.xlu1.b32.cont [3/8] (short) %v1652_v43, 128 }
 0x146   : > { %1655 = vxpose.xlu1.b32.cont [4/8] (short) %v1654_v45, 128 }
 0x14a   : > { %1657 = vxpose.xlu1.b32.cont [5/8] (short) %v1656_v10, 128 }
 0x14e   : > { %1659 = vxpose.xlu1.b32.cont [6/8] (short) %v1658_v13, 128 }
 0x152   : > { %1661 = vxpose.xlu1.b32.cont [7/8] (short) %v1660_v31, 128 }
 0x156   : > { %1663 = vxpose.xlu1.b32.end [8/8] (short) %v1662_v35, 128 }
 0x1b2   : > { %v1568_v46 = vpop.trf.xlu0 }
 0x1b3   : > { %v1572_v47 = vunpack.i.h.bf16 %v1568_v46  ;;  %v1569_v48 = vunpack.i.l.bf16 %v1568_v46 }
 0x1b6   : > { %v1573_v49 = vpop.trf.xlu0 }
 0x1b7   : > { %v1577_v50 = vunpack.i.h.bf16 %v1573_v49  ;;  %v1574_v51 = vunpack.i.l.bf16 %v1573_v49 }
 0x1b9   : > { %v507_v52 = vpack.c.bf16 %v1574_v51, %v1569_v48  ;;  %v515_v53 = vpack.c.bf16 %v1577_v50, %v1572_v47 }
 0x1ba   : > { %v1664_v55 = vpop.trf.xlu1  ;;  %v1578_v56 = vpop.trf.xlu0 }
 0x1bb   : > { %524 = vst.msk [vmem:[#allocation2] sm:$0xff] %vm523_vm1, %v507_v52  ;;  %532 = vst.msk [vmem:[#allocation2 + $0x40] sm:$0xff] %vm523_vm1, %v515_v53  ;;  %v1668_v54 = vunpack.i.h.bf16 %v1664_v55  ;;  %v1665_v57 = vunpack.i.l.bf16 %v1664_v55  ;;  %v1582_v59 = vunpack.i.h.bf16 %v1578_v56  ;;  %v1579_v60 = vunpack.i.l.bf16 %v1578_v56 }
 0x1be   : > { %v1669_v58 = vpop.trf.xlu1  ;;  %v1583_v61 = vpop.trf.xlu0 }
 0x1bf   : > { %v1673_v62 = vunpack.i.h.bf16 %v1669_v58  ;;  %v1670_v63 = vunpack.i.l.bf16 %v1669_v58  ;;  %v1587_v0 = vunpack.i.h.bf16 %v1583_v61  ;;  %v1584_v1 = vunpack.i.l.bf16 %v1583_v61 }
 0x1c1   : > { %v604_v2 = vpack.c.bf16 %v1670_v63, %v1665_v57  ;;  %v612_v3 = vpack.c.bf16 %v1673_v62, %v1668_v54  ;;  %v508_v5 = vpack.c.bf16 %v1584_v1, %v1579_v60  ;;  %v516_v6 = vpack.c.bf16 %v1587_v0, %v1582_v59 }
 0x1c2   : > { %v1674_v4 = vpop.trf.xlu1  ;;  %v1588_v7 = vpop.trf.xlu0 }
 0x1c3   : > { %620 = vst.msk [vmem:[#allocation4] sm:$0xff] %vm335_vm0, %v604_v2  ;;  %628 = vst.msk [vmem:[#allocation4 + $0x40] sm:$0xff] %vm335_vm0, %v612_v3  ;;  %v1678_v8 = vunpack.i.h.bf16 %v1674_v4  ;;  %v1675_v9 = vunpack.i.l.bf16 %v1674_v4  ;;  %v1592_v11 = vunpack.i.h.bf16 %v1588_v7  ;;  %v1589_v12 = vunpack.i.l.bf16 %v1588_v7 }
 0x1c4   : > { %525 = vst.msk [vmem:[#allocation2 + $0x8] sm:$0xff] %vm523_vm1, %v508_v5  ;;  %533 = vst.msk [vmem:[#allocation2 + $0x48] sm:$0xff] %vm523_vm1, %v516_v6 }
 0x1c6   : > { %v1679_v10 = vpop.trf.xlu1  ;;  %v1593_v13 = vpop.trf.xlu0 }
 0x1c7   : > { %v1683_v14 = vunpack.i.h.bf16 %v1679_v10  ;;  %v1680_v15 = vunpack.i.l.bf16 %v1679_v10  ;;  %v1597_v16 = vunpack.i.h.bf16 %v1593_v13  ;;  %v1594_v17 = vunpack.i.l.bf16 %v1593_v13 }
 0x1c9   : > { %v605_v18 = vpack.c.bf16 %v1680_v15, %v1675_v9  ;;  %v613_v19 = vpack.c.bf16 %v1683_v14, %v1678_v8  ;;  %v509_v21 = vpack.c.bf16 %v1594_v17, %v1589_v12  ;;  %v517_v22 = vpack.c.bf16 %v1597_v16, %v1592_v11 }
 0x1ca   : > { %v1684_v20 = vpop.trf.xlu1  ;;  %v1598_v23 = vpop.trf.xlu0 }
 0x1cb   : > { %621 = vst.msk [vmem:[#allocation4 + $0x8] sm:$0xff] %vm335_vm0, %v605_v18  ;;  %629 = vst.msk [vmem:[#allocation4 + $0x48] sm:$0xff] %vm335_vm0, %v613_v19  ;;  %v1688_v24 = vunpack.i.h.bf16 %v1684_v20  ;;  %v1685_v25 = vunpack.i.l.bf16 %v1684_v20  ;;  %v1602_v27 = vunpack.i.h.bf16 %v1598_v23  ;;  %v1599_v28 = vunpack.i.l.bf16 %v1598_v23 }
 0x1cc   : > { %526 = vst.msk [vmem:[#allocation2 + $0x10] sm:$0xff] %vm523_vm1, %v509_v21  ;;  %534 = vst.msk [vmem:[#allocation2 + $0x50] sm:$0xff] %vm523_vm1, %v517_v22 }
 0x1ce   : > { %v1689_v26 = vpop.trf.xlu1  ;;  %v1603_v29 = vpop.trf.xlu0 }
 0x1cf   : > { %v1693_v30 = vunpack.i.h.bf16 %v1689_v26  ;;  %v1690_v31 = vunpack.i.l.bf16 %v1689_v26  ;;  %v1607_v32 = vunpack.i.h.bf16 %v1603_v29  ;;  %v1604_v33 = vunpack.i.l.bf16 %v1603_v29 }
 0x1d1   : > { %v606_v34 = vpack.c.bf16 %v1690_v31, %v1685_v25  ;;  %v614_v35 = vpack.c.bf16 %v1693_v30, %v1688_v24  ;;  %v510_v37 = vpack.c.bf16 %v1604_v33, %v1599_v28  ;;  %v518_v38 = vpack.c.bf16 %v1607_v32, %v1602_v27 }
 0x1d2   : > { %v1694_v36 = vpop.trf.xlu1  ;;  %v1608_v39 = vpop.trf.xlu0 }
 0x1d3   : > { %622 = vst.msk [vmem:[#allocation4 + $0x10] sm:$0xff] %vm335_vm0, %v606_v34  ;;  %630 = vst.msk [vmem:[#allocation4 + $0x50] sm:$0xff] %vm335_vm0, %v614_v35  ;;  %v1698_v40 = vunpack.i.h.bf16 %v1694_v36  ;;  %v1695_v41 = vunpack.i.l.bf16 %v1694_v36  ;;  %v1612_v43 = vunpack.i.h.bf16 %v1608_v39  ;;  %v1609_v44 = vunpack.i.l.bf16 %v1608_v39 }
 0x1d4   : > { %527 = vst.msk [vmem:[#allocation2 + $0x18] sm:$0xff] %vm523_vm1, %v510_v37  ;;  %535 = vst.msk [vmem:[#allocation2 + $0x58] sm:$0xff] %vm523_vm1, %v518_v38 }
 0x1d6   : > { %v1699_v42 = vpop.trf.xlu1  ;;  %v1613_v45 = vpop.trf.xlu0 }
 0x1d7   : > { %v1703_v46 = vunpack.i.h.bf16 %v1699_v42  ;;  %v1700_v47 = vunpack.i.l.bf16 %v1699_v42  ;;  %v1617_v48 = vunpack.i.h.bf16 %v1613_v45  ;;  %v1614_v49 = vunpack.i.l.bf16 %v1613_v45 }
 0x1d9   : > { %v607_v50 = vpack.c.bf16 %v1700_v47, %v1695_v41  ;;  %v615_v51 = vpack.c.bf16 %v1703_v46, %v1698_v40  ;;  %v511_v53 = vpack.c.bf16 %v1614_v49, %v1609_v44  ;;  %v519_v55 = vpack.c.bf16 %v1617_v48, %v1612_v43 }
 0x1da   : > { %v1704_v52 = vpop.trf.xlu1  ;;  %v1618_v56 = vpop.trf.xlu0 }
 0x1db   : > { %623 = vst.msk [vmem:[#allocation4 + $0x18] sm:$0xff] %vm335_vm0, %v607_v50  ;;  %631 = vst.msk [vmem:[#allocation4 + $0x58] sm:$0xff] %vm335_vm0, %v615_v51  ;;  %v1708_v54 = vunpack.i.h.bf16 %v1704_v52  ;;  %v1705_v57 = vunpack.i.l.bf16 %v1704_v52  ;;  %v1622_v59 = vunpack.i.h.bf16 %v1618_v56  ;;  %v1619_v60 = vunpack.i.l.bf16 %v1618_v56 }
 0x1dc   : > { %528 = vst.msk [vmem:[#allocation2 + $0x20] sm:$0xff] %vm523_vm1, %v511_v53  ;;  %536 = vst.msk [vmem:[#allocation2 + $0x60] sm:$0xff] %vm523_vm1, %v519_v55 }
 0x1de   : > { %v1709_v58 = vpop.trf.xlu1  ;;  %v1623_v61 = vpop.trf.xlu0 }
 0x1df   : > { %v1713_v62 = vunpack.i.h.bf16 %v1709_v58  ;;  %v1710_v63 = vunpack.i.l.bf16 %v1709_v58  ;;  %v1627_v0 = vunpack.i.h.bf16 %v1623_v61  ;;  %v1624_v1 = vunpack.i.l.bf16 %v1623_v61 }
 0x1e1   : > { %v608_v2 = vpack.c.bf16 %v1710_v63, %v1705_v57  ;;  %v616_v3 = vpack.c.bf16 %v1713_v62, %v1708_v54  ;;  %v512_v5 = vpack.c.bf16 %v1624_v1, %v1619_v60  ;;  %v520_v6 = vpack.c.bf16 %v1627_v0, %v1622_v59 }
 0x1e2   : > { %v1714_v4 = vpop.trf.xlu1  ;;  %v1628_v7 = vpop.trf.xlu0 }
 0x1e3   : > { %624 = vst.msk [vmem:[#allocation4 + $0x20] sm:$0xff] %vm335_vm0, %v608_v2  ;;  %632 = vst.msk [vmem:[#allocation4 + $0x60] sm:$0xff] %vm335_vm0, %v616_v3  ;;  %v1718_v8 = vunpack.i.h.bf16 %v1714_v4  ;;  %v1715_v9 = vunpack.i.l.bf16 %v1714_v4  ;;  %v1632_v11 = vunpack.i.h.bf16 %v1628_v7  ;;  %v1629_v12 = vunpack.i.l.bf16 %v1628_v7 }
 0x1e4   : > { %529 = vst.msk [vmem:[#allocation2 + $0x28] sm:$0xff] %vm523_vm1, %v512_v5  ;;  %537 = vst.msk [vmem:[#allocation2 + $0x68] sm:$0xff] %vm523_vm1, %v520_v6 }
 0x1e6   : > { %v1719_v10 = vpop.trf.xlu1  ;;  %v1633_v13 = vpop.trf.xlu0 }
 0x1e7   : > { %v1723_v14 = vunpack.i.h.bf16 %v1719_v10  ;;  %v1720_v15 = vunpack.i.l.bf16 %v1719_v10  ;;  %v1637_v16 = vunpack.i.h.bf16 %v1633_v13  ;;  %v1634_v17 = vunpack.i.l.bf16 %v1633_v13 }
 0x1e9   : > { %v609_v18 = vpack.c.bf16 %v1720_v15, %v1715_v9  ;;  %v617_v19 = vpack.c.bf16 %v1723_v14, %v1718_v8  ;;  %v513_v21 = vpack.c.bf16 %v1634_v17, %v1629_v12  ;;  %v521_v22 = vpack.c.bf16 %v1637_v16, %v1632_v11 }
 0x1ea   : > { %v1724_v20 = vpop.trf.xlu1  ;;  %v1638_v23 = vpop.trf.xlu0 }
 0x1eb   : > { %625 = vst.msk [vmem:[#allocation4 + $0x28] sm:$0xff] %vm335_vm0, %v609_v18  ;;  %633 = vst.msk [vmem:[#allocation4 + $0x68] sm:$0xff] %vm335_vm0, %v617_v19  ;;  %v1728_v24 = vunpack.i.h.bf16 %v1724_v20  ;;  %v1725_v25 = vunpack.i.l.bf16 %v1724_v20  ;;  %v1642_v27 = vunpack.i.h.bf16 %v1638_v23  ;;  %v1639_v28 = vunpack.i.l.bf16 %v1638_v23 }
 0x1ec   : > { %530 = vst.msk [vmem:[#allocation2 + $0x30] sm:$0xff] %vm523_vm1, %v513_v21  ;;  %538 = vst.msk [vmem:[#allocation2 + $0x70] sm:$0xff] %vm523_vm1, %v521_v22 }
 0x1ee   : > { %v1729_v26 = vpop.trf.xlu1  ;;  %v1643_v29 = vpop.trf.xlu0 }
 0x1ef   : > { %v1733_v30 = vunpack.i.h.bf16 %v1729_v26  ;;  %v1730_v31 = vunpack.i.l.bf16 %v1729_v26  ;;  %v1647_v32 = vunpack.i.h.bf16 %v1643_v29  ;;  %v1644_v33 = vunpack.i.l.bf16 %v1643_v29 }
 0x1f1   : > { %v610_v34 = vpack.c.bf16 %v1730_v31, %v1725_v25  ;;  %v618_v35 = vpack.c.bf16 %v1733_v30, %v1728_v24  ;;  %v514_v37 = vpack.c.bf16 %v1644_v33, %v1639_v28  ;;  %v522_v38 = vpack.c.bf16 %v1647_v32, %v1642_v27 }
 0x1f2   : > { %v1734_v36 = vpop.trf.xlu1 }
 0x1f3   : > { %626 = vst.msk [vmem:[#allocation4 + $0x30] sm:$0xff] %vm335_vm0, %v610_v34  ;;  %634 = vst.msk [vmem:[#allocation4 + $0x70] sm:$0xff] %vm335_vm0, %v618_v35  ;;  %v1738_v39 = vunpack.i.h.bf16 %v1734_v36  ;;  %v1735_v40 = vunpack.i.l.bf16 %v1734_v36 }
 0x1f4   : > { %531 = vst.msk [vmem:[#allocation2 + $0x38] sm:$0xff] %vm523_vm1, %v514_v37  ;;  %539 = vst.msk [vmem:[#allocation2 + $0x78] sm:$0xff] %vm523_vm1, %v522_v38 }
 0x1f6   : > { %v1739_v41 = vpop.trf.xlu1 }
 0x1f7   : > { %v1743_v42 = vunpack.i.h.bf16 %v1739_v41  ;;  %v1740_v43 = vunpack.i.l.bf16 %v1739_v41 }
 0x1f9   : > { %v611_v44 = vpack.c.bf16 %v1740_v43, %v1735_v40  ;;  %v619_v45 = vpack.c.bf16 %v1743_v42, %v1738_v39 }
 0x1fb   : > { %627 = vst.msk [vmem:[#allocation4 + $0x38] sm:$0xff] %vm335_vm0, %v611_v44  ;;  %635 = vst.msk [vmem:[#allocation4 + $0x78] sm:$0xff] %vm335_vm0, %v619_v45 }
 0x1fc PF: > { %v649_v46 = vld [vmem:[#allocation3] sm:$0xff]  ;;  %vm680_vm2 = vcmask 1043456   ;;  %s1345_s28 = sshll.u32 %s1978_s23, 7  ;;  %v2000_v49 = vmov 0   ;;  %vm655_vm3 = vcmask 64512   ;;  %v1016_v59 = vld [vmem:[#allocation4 + $0x40] sm:$0xff] }
 0x1fd   : > { %v1348_v47 = vcombine.high %v649_v46, %v649_v46  ;;  %v1347_v48 = vcombine.low %v649_v46, %v649_v46  ;;  %719 = vmatprep.mubr.bf16.mxu0 %v2000_v49  ;;  %s637_s8 = sshra.s32 %s1345_s28, 4  ;;  %v1008_v60 = vld [vmem:[#allocation4] sm:$0xff]  ;;  %v1017_v61 = vld [vmem:[#allocation4 + $0x48] sm:$0xff]  ;;  %1438 = vmatprep.subr.bf16.mxu1 %v1016_v59  ;;  %v1018_v63 = vld [vmem:[#allocation4 + $0x50] sm:$0xff]  ;;  %s1197_s6 = sld [smem:[#allocation5]] }
 0x1fe   : > { %s1346_s10 = sshll.u32 %s637_s8, 3  ;;  %1446 = vmatpush3.bf16.msra.mxu1 %v1008_v60  ;;  %v1009_v62 = vld [vmem:[#allocation4 + $0x8] sm:$0xff]  ;;  %v1010_v0 = vld [vmem:[#allocation4 + $0x10] sm:$0xff]  ;;  %v1019_v1 = vld [vmem:[#allocation4 + $0x58] sm:$0xff]  ;;  %s1185_s5 = sshra.s32 %s1345_s28, 7 }
 0x1ff   : > { %1349 = vmatprep.subr.msk.bf16.mxu0 %vm680_vm2, %v1348_v47  ;;  %v682_v50 = vsel %vm680_vm2, %v1347_v48, 0  ;;  %s640_s27 = scalar_lea.vmem [#allocation2], %s1346_s10  ;;  %1439 = vmatprep.subr.bf16.mxu1 %v1017_v61  ;;  %v1011_v26 = vld [vmem:[#allocation4 + $0x18] sm:$0xff]  ;;  %v1020_v28 = vld [vmem:[#allocation4 + $0x60] sm:$0xff]  ;;  %v1021_v35 = vld [vmem:[#allocation4 + $0x68] sm:$0xff]  ;;  %s1358_s16 = sshll.u32 %s1185_s5, 3 }
 0x200   : > { %688 = vmatpush1.bf16.msra.mxu0 %v682_v50  ;;  %v641_v51 = vld [vmem:[%s640_s27] sm:$0xff]  ;;  %v642_v52 = vld [vmem:[%s640_s27 + $0x8] sm:$0xff]  ;;  %v643_v53 = vld [vmem:[%s640_s27 + $0x10] sm:$0xff]  ;;  %s2472_s20 = scalar_lea.vmem %s2180_s7, %s1358_s16 [#allocation6]  ;;  %s1360_s7 = sshll.u32 %s1982_s24, 4 }
 0x201   : > { %v644_v55 = vld [vmem:[%s640_s27 + $0x18] sm:$0xff]  ;;  %v645_v56 = vld [vmem:[%s640_s27 + $0x20] sm:$0xff]  ;;  %v646_v54 = vld [vmem:[%s640_s27 + $0x28] sm:$0xff]  ;;  %1366 = vmatprep.subr.bf16.mxu0 %v1016_v59  ;;  %s1235_s30 = sadd.s32 %s1978_s23, %s1360_s7  ;;  %s1238_s28 = sshll.u32 %s2189_s11, 4  ;;  %s2497_s28 = int_to_ptr.vmem [resolvable:$true] %s1238_s28 }
 0x202   : > { %v647_v57 = vld [vmem:[%s640_s27 + $0x30] sm:$0xff]  ;;  %v648_v58 = vld [vmem:[%s640_s27 + $0x38] sm:$0xff]  ;;  %1447 = vmatpush3.bf16.msra.mxu1 %v1009_v62  ;;  %v1012_v30 = vld [vmem:[#allocation4 + $0x20] sm:$0xff]  ;;  %s1361_s9 = sshll.u32 %s1235_s30, 7  ;;  %s2578_s23 = sand.u32 1, %s1958_s18  }
 0x203   : > { %1350 = vmatmul.mubr.msk.bf16.vlgmr.msra.gmra.mrb[0].mxu0 %vm655_vm3, %v641_v51  ;;  %1440 = vmatprep.subr.bf16.mxu1 %v1018_v63  ;;  %v1013_v36 = vld [vmem:[#allocation4 + $0x28] sm:$0xff]  ;;  %v1022_v38 = vld [vmem:[#allocation4 + $0x70] sm:$0xff]  ;;  %v1023_v45 = vld [vmem:[#allocation4 + $0x78] sm:$0xff]  ;;  %s2495_s10 = scalar_lea.hbm %s2567_s4, %s1361_s9  ;;  %s2502_s27 = scalar_lea.sflag [#allocation8], %s2578_s23 }
 0x204   : > { %729 = vmatprep.mubr.bf16.mxu0 %v2000_v49  ;;  %1367 = vmatpush3.bf16.msra.mxu0 %v1008_v60  ;;  %v1014_v40 = vld [vmem:[#allocation4 + $0x30] sm:$0xff]  ;;  %v1015_v46 = vld [vmem:[#allocation4 + $0x38] sm:$0xff]  ;;  %p2579_p2 = scmp.ne.s32.totalorder %s2574_s12, 0  ;;  %s2001_s5 = smov [#allocation9]  }
 0x205   : > { %1368 = vmatprep.subr.bf16.mxu0 %v1017_v61  ;;  %s1876_s16 = sshll.u32 %s2001_s5, 4  ;;  %s1877_s16 = int_to_ptr.vmem [resolvable:$false] %s1876_s16 }
 0x206   : > { %1448 = vmatpush3.bf16.msra.mxu1 %v1010_v0  ;;  %p1879_p1 = scmp.lt.s32.totalorder %s2497_s28, %s1877_s16 }
 0x207   : > { %1441 = vmatprep.subr.bf16.mxu1 %v1019_v1 }
 0x208   : > { %1369 = vmatpush3.bf16.msra.mxu0 %v1009_v62 }
 0x209   : > { %1370 = vmatprep.subr.bf16.mxu0 %v1018_v63 }
 0x20a   : > { %1449 = vmatpush3.bf16.msra.mxu1 %v1011_v26 }
 0x20b   : > { %1351 = vmatmul.mubr.msk.bf16.gmra.mrb[4].mxu0 %vm655_vm3, %v642_v52  ;;  %1442 = vmatprep.subr.bf16.mxu1 %v1020_v28 }
 0x20c   : > { %739 = vmatprep.mubr.bf16.mxu0 %v2000_v49  ;;  %1371 = vmatpush3.bf16.msra.mxu0 %v1010_v0 }
 0x20d   : > { %1372 = vmatprep.subr.bf16.mxu0 %v1019_v1 }
 0x20e   : > { %1450 = vmatpush3.bf16.msra.mxu1 %v1012_v30 }
 0x20f   : > { %1443 = vmatprep.subr.bf16.mxu1 %v1021_v35 }
 0x210   : > { %1373 = vmatpush3.bf16.msra.mxu0 %v1011_v26 }
 0x211   : > { %1374 = vmatprep.subr.bf16.mxu0 %v1020_v28 }
 0x212   : > { %1451 = vmatpush3.bf16.msra.mxu1 %v1013_v36 }
 0x213   : > { %1352 = vmatmul.mubr.msk.bf16.gmra.mrb[8].mxu0 %vm655_vm3, %v643_v53  ;;  %1444 = vmatprep.subr.bf16.mxu1 %v1022_v38 }
 0x214   : > { %749 = vmatprep.mubr.bf16.mxu0 %v2000_v49  ;;  %1375 = vmatpush3.bf16.msra.mxu0 %v1012_v30 }
 0x215   : > { %1376 = vmatprep.subr.bf16.mxu0 %v1021_v35 }
 0x216   : > { %1452 = vmatpush3.bf16.msra.mxu1 %v1014_v40 }
 0x217   : > { %1445 = vmatprep.subr.bf16.mxu1 %v1023_v45 }
 0x218   : > { %1377 = vmatpush3.bf16.msra.mxu0 %v1013_v36 }
 0x219   : > { %1378 = vmatprep.subr.bf16.mxu0 %v1022_v38 }
 0x21a   : > { %1453 = vmatpush3.bf16.msra.mxu1 %v1015_v46 }
 0x21b   : > { %1353 = vmatmul.mubr.msk.bf16.gmra.mrb[12].mxu0 %vm655_vm3, %v644_v55 }
 0x21c   : > { %759 = vmatprep.mubr.bf16.mxu0 %v2000_v49  ;;  %1379 = vmatpush3.bf16.msra.mxu0 %v1014_v40 }
 0x21d   : > { %1380 = vmatprep.subr.bf16.mxu0 %v1023_v45 }
 0x220   : > { %1381 = vmatpush3.bf16.msra.mxu0 %v1015_v46 }
 0x223   : > { %1354 = vmatmul.mubr.msk.bf16.gmra.mrb[16].mxu0 %vm655_vm3, %v645_v56 }
 0x224   : > { %769 = vmatprep.mubr.bf16.mxu0 %v2000_v49 }
 0x22b   : > { %1355 = vmatmul.mubr.msk.bf16.gmra.mrb[20].mxu0 %vm655_vm3, %v646_v54 }
 0x22c   : > { %779 = vmatprep.mubr.bf16.mxu0 %v2000_v49 }
 0x233   : > { %1356 = vmatmul.mubr.msk.bf16.gmra.mrb[24].mxu0 %vm655_vm3, %v647_v57 }
 0x234   : > { %789 = vmatprep.mubr.bf16.mxu0 %v2000_v49 }
 0x23b   : > { %1357 = vmatmul.mubr.msk.bf16.gmra.mrb[28].mxu0 %vm655_vm3, %v648_v58 }
 0x2d6   : > { %v2323_v2 = vpop.f32.mrb[0].mxu0 }
 0x2d7   : > { %v2325_v3 = vpop.f32.mrb[1].mxu0 }
 0x2d8   : > { %v2327_v4 = vpop.f32.mrb[2].mxu0  ;;  %v800_v5 = vmax.f32 %v2323_v2, %v2325_v3 }
 0x2d9   : > { %v2331_v6 = vpop.f32.mrb[3].mxu0 }
 0x2da   : > { %v803_v7 = vmax.f32 %v2327_v4, %v2331_v6 }
 0x2de   : > { %v2335_v8 = vpop.f32.mrb[4].mxu0 }
 0x2df   : > { %v2337_v9 = vpop.f32.mrb[5].mxu0 }
 0x2e0   : > { %v2339_v10 = vpop.f32.mrb[6].mxu0  ;;  %v806_v11 = vmax.f32 %v2335_v8, %v2337_v9 }
 0x2e1   : > { %v2343_v12 = vpop.f32.mrb[7].mxu0 }
 0x2e2   : > { %807 = vmax.xlane.f32.xlu0 %v806_v11  ;;  %v809_v13 = vmax.f32 %v2339_v10, %v2343_v12 }
 0x2e6   : > { %810 = vmax.xlane.f32.xlu0 %v809_v13  ;;  %v2347_v14 = vpop.f32.mrb[8].mxu0 }
 0x2e7   : > { %v2349_v15 = vpop.f32.mrb[9].mxu0 }
 0x2e8   : > { %v2351_v16 = vpop.f32.mrb[10].mxu0  ;;  %v812_v17 = vmax.f32 %v2347_v14, %v2349_v15 }
 0x2e9   : > { %v2355_v18 = vpop.f32.mrb[11].mxu0 }
 0x2ea   : > { %813 = vmax.xlane.f32.xlu1 %v812_v17  ;;  %v815_v19 = vmax.f32 %v2351_v16, %v2355_v18 }
 0x2ee   : > { %816 = vmax.xlane.f32.xlu1 %v815_v19  ;;  %v2359_v20 = vpop.f32.mrb[12].mxu0 }
 0x2ef   : > { %v2361_v21 = vpop.f32.mrb[13].mxu0 }
 0x2f0   : > { %v2363_v22 = vpop.f32.mrb[14].mxu0  ;;  %v818_v23 = vmax.f32 %v2359_v20, %v2361_v21 }
 0x2f1   : > { %v2367_v24 = vpop.f32.mrb[15].mxu0 }
 0x2f2   : > { %819 = vmax.xlane.f32.xlu0 %v818_v23  ;;  %v821_v25 = vmax.f32 %v2363_v22, %v2367_v24 }
 0x2f4   : > { %822 = vmax.xlane.f32.xlu1 %v821_v25 }
 0x2f6   : > { %801 = vmax.xlane.f32.xlu0 %v800_v5  ;;  %v2371_v27 = vpop.f32.mrb[16].mxu0 }
 0x2f7   : > { %v2373_v29 = vpop.f32.mrb[17].mxu0 }
 0x2f8   : > { %804 = vmax.xlane.f32.xlu1 %v803_v7  ;;  %v2375_v31 = vpop.f32.mrb[18].mxu0  ;;  %v824_v32 = vmax.f32 %v2371_v27, %v2373_v29 }
 0x2f9   : > { %v2379_v33 = vpop.f32.mrb[19].mxu0 }
 0x2fa   : > { %825 = vmax.xlane.f32.xlu0 %v824_v32  ;;  %v827_v34 = vmax.f32 %v2375_v31, %v2379_v33 }
 0x2fc   : > { %828 = vmax.xlane.f32.xlu1 %v827_v34 }
 0x2fe   : > { %v2383_v37 = vpop.f32.mrb[20].mxu0 }
 0x2ff   : > { %v2385_v39 = vpop.f32.mrb[21].mxu0 }
 0x300   : > { %v2387_v41 = vpop.f32.mrb[22].mxu0  ;;  %v830_v42 = vmax.f32 %v2383_v37, %v2385_v39 }
 0x301   : > { %v2391_v43 = vpop.f32.mrb[23].mxu0 }
 0x302   : > { %831 = vmax.xlane.f32.xlu0 %v830_v42  ;;  %v833_v44 = vmax.f32 %v2387_v41, %v2391_v43 }
 0x304   : > { %834 = vmax.xlane.f32.xlu1 %v833_v44 }
 0x306   : > { %v2395_v47 = vpop.f32.mrb[24].mxu0 }
 0x307   : > { %v2397_v48 = vpop.f32.mrb[25].mxu0 }
 0x308   : > { %v2399_v49 = vpop.f32.mrb[26].mxu0  ;;  %v836_v50 = vmax.f32 %v2395_v47, %v2397_v48 }
 0x309   : > { %v2403_v51 = vpop.f32.mrb[27].mxu0 }
 0x30a   : > { %837 = vmax.xlane.f32.xlu0 %v836_v50  ;;  %v839_v52 = vmax.f32 %v2399_v49, %v2403_v51 }
 0x30c   : > { %840 = vmax.xlane.f32.xlu1 %v839_v52 }
 0x30e   : > { %v2407_v53 = vpop.f32.mrb[28].mxu0 }
 0x30f   : > { %v2409_v55 = vpop.f32.mrb[29].mxu0 }
 0x310   : > { %v2411_v56 = vpop.f32.mrb[30].mxu0  ;;  %v842_v54 = vmax.f32 %v2407_v53, %v2409_v55 }
 0x311   : > { %v2415_v57 = vpop.f32.mrb[31].mxu0 }
 0x312   : > { %843 = vmax.xlane.f32.xlu0 %v842_v54  ;;  %v845_v58 = vmax.f32 %v2411_v56, %v2415_v57 }
 0x314   : > { %846 = vmax.xlane.f32.xlu1 %v845_v58 }
 0x36f   : > { %v808_v59 = vpop.xlane.xlu0 %807 }
 0x370   : > { %v852_v60 = vsub.f32 %v2335_v8, %v808_v59  ;;  %v853_v61 = vsub.f32 %v2337_v9, %v808_v59 }
 0x372   : > { %v888_v62 = vmul.f32 1.442695, %v852_v60  ;;  %v890_v63 = vmul.f32 1.442695, %v853_v61 }
 0x373   : > { %v811_v0 = vpop.xlane.xlu0 %810 }
 0x374   : > { %1746 = vpow2.f32 %v888_v62  ;;  %v854_v1 = vsub.f32 %v2339_v10, %v811_v0  ;;  %v855_v5 = vsub.f32 %v2343_v12, %v811_v0 }
 0x375   : > { %1748 = vpow2.f32 %v890_v63 }
 0x376   : > { %v892_v7 = vmul.f32 1.442695, %v854_v1  ;;  %v894_v11 = vmul.f32 1.442695, %v855_v5 }
 0x377   : > { %v814_v13 = vpop.xlane.xlu1 %813 }
 0x378   : > { %1750 = vpow2.f32 %v892_v7  ;;  %v856_v17 = vsub.f32 %v2347_v14, %v814_v13  ;;  %v857_v19 = vsub.f32 %v2349_v15, %v814_v13 }
 0x379   : > { %1752 = vpow2.f32 %v894_v11 }
 0x37a   : > { %v896_v8 = vmul.f32 1.442695, %v856_v17  ;;  %v898_v9 = vmul.f32 1.442695, %v857_v19 }
 0x37b   : > { %v817_v23 = vpop.xlane.xlu1 %816 }
 0x37c   : > { %1754 = vpow2.f32 %v896_v8  ;;  %v858_v25 = vsub.f32 %v2351_v16, %v817_v23  ;;  %v859_v10 = vsub.f32 %v2355_v18, %v817_v23 }
 0x37d   : > { %1756 = vpow2.f32 %v898_v9 }
 0x37e   : > { %v1747_v12 = vpop.eup %1746  ;;  %v900_v26 = vmul.f32 1.442695, %v858_v25  ;;  %v902_v28 = vmul.f32 1.442695, %v859_v10 }
 0x37f   : > { %v1749_v30 = vpop.eup %1748  ;;  %v820_v32 = vpop.xlane.xlu0 %819 }
 0x380   : > { %1758 = vpow2.f32 %v900_v26  ;;  %v860_v14 = vsub.f32 %v2359_v20, %v820_v32  ;;  %v861_v15 = vsub.f32 %v2361_v21, %v820_v32  ;;  %v2429_v34 = vadd.f32 %v1749_v30, %v1747_v12 }
 0x381   : > { %1760 = vpow2.f32 %v902_v28  ;;  %v823_v35 = vpop.xlane.xlu1 %822 }
 0x382   : > { %v1751_v36 = vpop.eup %1750  ;;  %v904_v38 = vmul.f32 1.442695, %v860_v14  ;;  %v906_v16 = vmul.f32 1.442695, %v861_v15  ;;  %v862_v18 = vsub.f32 %v2363_v22, %v823_v35  ;;  %v863_v40 = vsub.f32 %v2367_v24, %v823_v35 }
 0x383   : > { %v1753_v42 = vpop.eup %1752  ;;  %v802_v44 = vpop.xlane.xlu0 %801  ;;  %v994_v45 = vpack.c.bf16 %v1751_v36, %v1747_v12 }
 0x384   : > { %1762 = vpow2.f32 %v904_v38  ;;  %v908_v46 = vmul.f32 1.442695, %v862_v18  ;;  %v910_v50 = vmul.f32 1.442695, %v863_v40  ;;  %v848_v20 = vsub.f32 %v2323_v2, %v802_v44 }
 0x385   : > { %1764 = vpow2.f32 %v906_v16  ;;  %v849_v21 = vsub.f32 %v2325_v3, %v802_v44  ;;  %v995_v52 = vpack.c.bf16 %v1753_v42, %v1749_v30  ;;  %v805_v54 = vpop.xlane.xlu1 %804  ;;  %v2435_v58 = vadd.f32 %v1753_v42, %v1751_v36 }
 0x386   : > { %v1755_v59 = vpop.eup %1754  ;;  %1766 = vpow2.f32 %v908_v46  ;;  %v880_v22 = vmul.f32 1.442695, %v848_v20  ;;  %v850_v24 = vsub.f32 %v2327_v4, %v805_v54  ;;  %v851_v60 = vsub.f32 %v2331_v6, %v805_v54 }
 0x387   : > { %v1757_v61 = vpop.eup %1756  ;;  %1768 = vpow2.f32 %v910_v50  ;;  %v882_v62 = vmul.f32 1.442695, %v849_v21  ;;  %1064 = vmatprep.mubr.bf16.mxu1 %v995_v52  ;;  %v826_v63 = vpop.xlane.xlu0 %825 }
 0x388   : > { %1770 = vpow2.f32 %v880_v22  ;;  %v884_v2 = vmul.f32 1.442695, %v850_v24  ;;  %v886_v0 = vmul.f32 1.442695, %v851_v60  ;;  %1065 = vmatmul.mubr.bf16.vlgmr.msra.gmra.mrb[0].mxu1 %v994_v45  ;;  %v864_v3 = vsub.f32 %v2371_v27, %v826_v63 }
 0x389   : > { %1772 = vpow2.f32 %v882_v62  ;;  %v865_v1 = vsub.f32 %v2373_v29, %v826_v63  ;;  %v829_v5 = vpop.xlane.xlu1 %828  ;;  %v2441_v7 = vadd.f32 %v1757_v61, %v1755_v59 }
 0x38a   : > { %v1759_v4 = vpop.eup %1758  ;;  %1774 = vpow2.f32 %v884_v2  ;;  %v912_v6 = vmul.f32 1.442695, %v864_v3  ;;  %v866_v11 = vsub.f32 %v2375_v31, %v829_v5  ;;  %v867_v13 = vsub.f32 %v2379_v33, %v829_v5 }
 0x38b   : > { %v1761_v17 = vpop.eup %1760  ;;  %1776 = vpow2.f32 %v886_v0  ;;  %v914_v19 = vmul.f32 1.442695, %v865_v1  ;;  %v996_v8 = vpack.c.bf16 %v1759_v4, %v1755_v59 }
 0x38c   : > { %1778 = vpow2.f32 %v912_v6  ;;  %v916_v9 = vmul.f32 1.442695, %v866_v11  ;;  %v918_v27 = vmul.f32 1.442695, %v867_v13  ;;  %v997_v23 = vpack.c.bf16 %v1761_v17, %v1757_v61 }
 0x38d   : > { %1780 = vpow2.f32 %v914_v19  ;;  %v2445_v29 = vadd.f32 %v1761_v17, %v1759_v4 }
 0x38e   : > { %v1763_v25 = vpop.eup %1762  ;;  %1782 = vpow2.f32 %v916_v9  ;;  %1072 = vmatprep.mubr.bf16.mxu1 %v997_v23 }
 0x38f   : > { %v1765_v10 = vpop.eup %1764  ;;  %1784 = vpow2.f32 %v918_v27  ;;  %v832_v12 = vpop.xlane.xlu0 %831 }
 0x390   : > { %v1767_v31 = vpop.eup %1766  ;;  %1073 = vmatmul.mubr.bf16.gmra.mrb[4].mxu1 %v996_v8  ;;  %v868_v33 = vsub.f32 %v2383_v37, %v832_v12  ;;  %v869_v26 = vsub.f32 %v2385_v39, %v832_v12  ;;  %v2449_v28 = vadd.f32 %v1765_v10, %v1763_v25 }
 0x391   : > { %v1769_v30 = vpop.eup %1768  ;;  %v835_v32 = vpop.xlane.xlu1 %834  ;;  %v998_v14 = vpack.c.bf16 %v1767_v31, %v1763_v25 }
 0x392   : > { %v1771_v15 = vpop.eup %1770  ;;  %v920_v35 = vmul.f32 1.442695, %v868_v33  ;;  %v922_v36 = vmul.f32 1.442695, %v869_v26  ;;  %v870_v38 = vsub.f32 %v2387_v41, %v835_v32  ;;  %v871_v16 = vsub.f32 %v2391_v43, %v835_v32 }
 0x393   : > { %v1773_v18 = vpop.eup %1772  ;;  %v999_v40 = vpack.c.bf16 %v1769_v30, %v1765_v10  ;;  %v2453_v42 = vadd.f32 %v1769_v30, %v1767_v31 }
 0x394   : > { %v1775_v44 = vpop.eup %1774  ;;  %1786 = vpow2.f32 %v920_v35  ;;  %v924_v37 = vmul.f32 1.442695, %v870_v38  ;;  %v926_v39 = vmul.f32 1.442695, %v871_v16  ;;  %v944_v45 = vadd.f32 %v1773_v18, %v1771_v15 }
 0x395   : > { %v1777_v46 = vpop.eup %1776  ;;  %1788 = vpow2.f32 %v922_v36  ;;  %1080 = vmatprep.mubr.bf16.mxu1 %v999_v40  ;;  %v992_v50 = vpack.c.bf16 %v1775_v44, %v1771_v15 }
 0x396   : > { %v1779_v20 = vpop.eup %1778  ;;  %1790 = vpow2.f32 %v924_v37  ;;  %945 = vadd.xlane.f32.xlu0 %v944_v45  ;;  %v993_v21 = vpack.c.bf16 %v1777_v46, %v1773_v18  ;;  %v947_v41 = vadd.f32 %v1777_v46, %v1775_v44 }
 0x397   : > { %v1781_v52 = vpop.eup %1780  ;;  %1792 = vpow2.f32 %v926_v39  ;;  %v838_v43 = vpop.xlane.xlu0 %837 }
 0x398   : > { %v1783_v54 = vpop.eup %1782  ;;  %1081 = vmatmul.mubr.bf16.gmra.mrb[8].mxu1 %v998_v14  ;;  %1056 = vmatprep.mubr.bf16.mxu0 %v993_v21  ;;  %v872_v59 = vsub.f32 %v2395_v47, %v838_v43  ;;  %v873_v22 = vsub.f32 %v2397_v48, %v838_v43  ;;  %v968_v24 = vadd.f32 %v1781_v52, %v1779_v20 }
 0x399   : > { %v1785_v60 = vpop.eup %1784  ;;  %948 = vadd.xlane.f32.xlu1 %v947_v41  ;;  %1057 = vmatmul.mubr.bf16.vlgmr.msra.gmra.mrb[32].mxu0 %v992_v50  ;;  %v841_v61 = vpop.xlane.xlu1 %840  ;;  %v1000_v62 = vpack.c.bf16 %v1783_v54, %v1779_v20 }
 0x39a   : > { %v928_v63 = vmul.f32 1.442695, %v872_v59  ;;  %v930_v2 = vmul.f32 1.442695, %v873_v22  ;;  %v874_v0 = vsub.f32 %v2399_v49, %v841_v61  ;;  %v875_v3 = vsub.f32 %v2403_v51, %v841_v61  ;;  %951 = vadd.xlane.f32.xlu0 %v2429_v34 }
 0x39b   : > { %v1001_v1 = vpack.c.bf16 %v1785_v60, %v1781_v52  ;;  %v971_v5 = vadd.f32 %v1785_v60, %v1783_v54 }
 0x39c   : > { %1794 = vpow2.f32 %v928_v63  ;;  %v932_v47 = vmul.f32 1.442695, %v874_v0  ;;  %v934_v4 = vmul.f32 1.442695, %v875_v3 }
 0x39d   : > { %1796 = vpow2.f32 %v930_v2  ;;  %1088 = vmatprep.mubr.bf16.mxu1 %v1001_v1  ;;  %954 = vadd.xlane.f32.xlu1 %v2435_v58 }
 0x39e   : > { %v1787_v48 = vpop.eup %1786  ;;  %1798 = vpow2.f32 %v932_v47  ;;  %957 = vadd.xlane.f32.xlu0 %v2441_v7 }
 0x39f   : > { %v1789_v6 = vpop.eup %1788  ;;  %1800 = vpow2.f32 %v934_v4  ;;  %v844_v49 = vpop.xlane.xlu0 %843 }
 0x3a0   : > { %v1791_v11 = vpop.eup %1790  ;;  %1089 = vmatmul.mubr.bf16.gmra.mrb[12].mxu1 %v1000_v62  ;;  %v876_v51 = vsub.f32 %v2407_v53, %v844_v49  ;;  %v877_v34 = vsub.f32 %v2409_v55, %v844_v49  ;;  %v974_v13 = vadd.f32 %v1789_v6, %v1787_v48 }
 0x3a1   : > { %v1793_v17 = vpop.eup %1792  ;;  %960 = vadd.xlane.f32.xlu1 %v2445_v29  ;;  %v847_v19 = vpop.xlane.xlu1 %846  ;;  %v1002_v8 = vpack.c.bf16 %v1791_v11, %v1787_v48 }
 0x3a2   : > { %v936_v58 = vmul.f32 1.442695, %v876_v51  ;;  %v938_v9 = vmul.f32 1.442695, %v877_v34  ;;  %963 = vadd.xlane.f32.xlu0 %v2449_v28  ;;  %v878_v7 = vsub.f32 %v2411_v56, %v847_v19  ;;  %v879_v27 = vsub.f32 %v2415_v57, %v847_v19 }
 0x3a3   : > { %v1003_v23 = vpack.c.bf16 %v1793_v17, %v1789_v6  ;;  %v977_v25 = vadd.f32 %v1793_v17, %v1791_v11 }
 0x3a4   : > { %1802 = vpow2.f32 %v936_v58  ;;  %v940_v53 = vmul.f32 1.442695, %v878_v7  ;;  %v942_v10 = vmul.f32 1.442695, %v879_v27 }
 0x3a5   : > { %1804 = vpow2.f32 %v938_v9  ;;  %1096 = vmatprep.mubr.bf16.mxu1 %v1003_v23  ;;  %966 = vadd.xlane.f32.xlu1 %v2453_v42 }
 0x3a6   : > { %v1795_v55 = vpop.eup %1794  ;;  %1806 = vpow2.f32 %v940_v53  ;;  %969 = vadd.xlane.f32.xlu0 %v968_v24 }
 0x3a7   : > { %v1797_v29 = vpop.eup %1796  ;;  %1808 = vpow2.f32 %v942_v10 }
 0x3a8   : > { %v1799_v12 = vpop.eup %1798  ;;  %1097 = vmatmul.mubr.bf16.gmra.mrb[16].mxu1 %v1002_v8  ;;  %v980_v31 = vadd.f32 %v1797_v29, %v1795_v55 }
 0x3a9   : > { %v1801_v56 = vpop.eup %1800  ;;  %972 = vadd.xlane.f32.xlu1 %v971_v5  ;;  %v1004_v57 = vpack.c.bf16 %v1799_v12, %v1795_v55 }
 0x3aa   : > { %975 = vadd.xlane.f32.xlu0 %v974_v13  ;;  %v1005_v33 = vpack.c.bf16 %v1801_v56, %v1797_v29  ;;  %v983_v26 = vadd.f32 %v1801_v56, %v1799_v12 }
 0x3ac   : > { %1104 = vmatprep.mubr.bf16.mxu1 %v1005_v33 }
 0x3ad   : > { %978 = vadd.xlane.f32.xlu1 %v977_v25 }
 0x3ae   : > { %v1803_v28 = vpop.eup %1802  ;;  %981 = vadd.xlane.f32.xlu0 %v980_v31 }
 0x3af   : > { %v1805_v30 = vpop.eup %1804 }
 0x3b0   : > { %v1807_v32 = vpop.eup %1806  ;;  %1105 = vmatmul.mubr.bf16.gmra.mrb[20].mxu1 %v1004_v57  ;;  %v986_v14 = vadd.f32 %v1805_v30, %v1803_v28 }
 0x3b1   : > { %v1809_v15 = vpop.eup %1808  ;;  %984 = vadd.xlane.f32.xlu1 %v983_v26  ;;  %v1006_v35 = vpack.c.bf16 %v1807_v32, %v1803_v28 }
 0x3b2   : > { %987 = vadd.xlane.f32.xlu0 %v986_v14  ;;  %v1007_v36 = vpack.c.bf16 %v1809_v15, %v1805_v30  ;;  %v989_v38 = vadd.f32 %v1809_v15, %v1807_v32 }
 0x3b4   : > { %1112 = vmatprep.mubr.bf16.mxu1 %v1007_v36 }
 0x3b5   : > { %990 = vadd.xlane.f32.xlu1 %v989_v38 }
 0x3b8   : > { %1113 = vmatmul.mubr.bf16.gmra.mrb[24].mxu1 %v1006_v35 }
 0x423   : > { %v946_v39 = vpop.xlane.xlu0 %945 }
 0x424   : > { %1810 = vrcp.f32 %v946_v39 }
 0x426   : > { %v949_v50 = vpop.xlane.xlu1 %948 }
 0x427   : > { %1812 = vrcp.f32 %v949_v50  ;;  %v952_v43 = vpop.xlane.xlu0 %951 }
 0x428   : > { %1814 = vrcp.f32 %v952_v43 }
 0x42a   : > { %v955_v54 = vpop.xlane.xlu1 %954 }
 0x42b   : > { %1816 = vrcp.f32 %v955_v54  ;;  %v958_v48 = vpop.xlane.xlu0 %957 }
 0x42c   : > { %1818 = vrcp.f32 %v958_v48 }
 0x42e   : > { %v1811_v3 = vpop.eup %1810  ;;  %v961_v17 = vpop.xlane.xlu1 %960 }
 0x42f   : > { %1820 = vrcp.f32 %v961_v17  ;;  %v964_v7 = vpop.xlane.xlu0 %963  ;;  %v1190_v17 = vld [vmem:[%s2472_s20 + $0x10] sm:$0xff] }
 0x430   : > { %1822 = vrcp.f32 %v964_v7 }
 0x431   : > { %v1813_v6 = vpop.eup %1812 }
 0x432   : > { %v1815_v8 = vpop.eup %1814  ;;  %v967_v29 = vpop.xlane.xlu1 %966 }
 0x433   : > { %1824 = vrcp.f32 %v967_v29  ;;  %v970_v33 = vpop.xlane.xlu0 %969  ;;  %v1193_v29 = vld [vmem:[%s2472_s20 + $0x40] sm:$0xff] }
 0x434   : > { %1826 = vrcp.f32 %v970_v33 }
 0x435   : > { %v1817_v27 = vpop.eup %1816 }
 0x436   : > { %v1819_v31 = vpop.eup %1818  ;;  %v973_v35 = vpop.xlane.xlu1 %972 }
 0x437   : > { %1828 = vrcp.f32 %v973_v35  ;;  %v1196_v35 = vld [vmem:[%s2472_s20 + $0x70] sm:$0xff] }
 0x439   : > { %v1821_v26 = vpop.eup %1820 }
 0x43a   : > { %v1823_v38 = vpop.eup %1822  ;;  %v979_v50 = vpop.xlane.xlu1 %978 }
 0x45b   : > { %v1388_v16 = vpop.f32.mrb[0].mxu1 }
 0x45c   : > { %v1389_v18 = vpop.f32.mrb[1].mxu1 }
 0x45d   : > { %v1390_v40 = vadd.f32 %v1389_v18, %v1388_v16  ;;  %v1391_v42 = vpop.f32.mrb[2].mxu1 }
 0x45e   : > { %v1392_v44 = vpop.f32.mrb[3].mxu1 }
 0x45f   : > { %v1393_v37 = vadd.f32 %v1392_v44, %v1391_v42  ;;  %v1139_v9 = vmul.f32 %v1815_v8, %v1390_v40  ;;  %v976_v40 = vpop.xlane.xlu0 %975  ;;  %v1825_v42 = vpop.eup %1824 }
 0x460   : > { %1830 = vrcp.f32 %v976_v40 }
 0x461   : > { %v1140_v25 = vmul.f32 %v1817_v27, %v1393_v37  ;;  %1832 = vrcp.f32 %v979_v50 }
 0x463   : > { %v1394_v45 = vpop.f32.mrb[4].mxu1  ;;  %v982_v43 = vpop.xlane.xlu0 %981 }
 0x464   : > { %v1395_v46 = vpop.f32.mrb[5].mxu1  ;;  %1834 = vrcp.f32 %v982_v43 }
 0x465   : > { %v1396_v20 = vadd.f32 %v1395_v46, %v1394_v45  ;;  %v1397_v21 = vpop.f32.mrb[6].mxu1 }
 0x466   : > { %v1398_v41 = vpop.f32.mrb[7].mxu1 }
 0x467   : > { %v1399_v52 = vadd.f32 %v1398_v41, %v1397_v21  ;;  %v1141_v57 = vmul.f32 %v1819_v31, %v1396_v20  ;;  %v1827_v21 = vpop.eup %1826 }
 0x468   : > { %v1829_v54 = vpop.eup %1828 }
 0x469   : > { %v1142_v30 = vmul.f32 %v1821_v26, %v1399_v52 }
 0x46b   : > { %v1400_v59 = vpop.f32.mrb[8].mxu1 }
 0x46c   : > { %v1401_v22 = vpop.f32.mrb[9].mxu1  ;;  %v1382_v24 = vpop.f32.mrb[32].mxu0 }
 0x46d   : > { %v1402_v60 = vadd.f32 %v1401_v22, %v1400_v59  ;;  %v1403_v61 = vpop.f32.mrb[10].mxu1  ;;  %v1383_v62 = vpop.f32.mrb[33].mxu0 }
 0x46e   : > { %v1384_v63 = vadd.f32 %v1383_v62, %v1382_v24  ;;  %v1404_v2 = vpop.f32.mrb[11].mxu1  ;;  %v1385_v0 = vpop.f32.mrb[34].mxu0 }
 0x46f   : > { %v1405_v1 = vadd.f32 %v1404_v2, %v1403_v61  ;;  %v1386_v5 = vpop.f32.mrb[35].mxu0  ;;  %v1143_v18 = vmul.f32 %v1823_v38, %v1402_v60  ;;  %v985_v22 = vpop.xlane.xlu1 %984 }
 0x470   : > { %v1387_v47 = vadd.f32 %v1386_v5, %v1385_v0  ;;  %v1137_v4 = vmul.f32 %v1811_v3, %v1384_v63  ;;  %v1831_v24 = vpop.eup %1830  ;;  %1836 = vrcp.f32 %v985_v22  ;;  %v988_v61 = vpop.xlane.xlu0 %987 }
 0x471   : > { %v1144_v37 = vmul.f32 %v1825_v42, %v1405_v1  ;;  %v1833_v62 = vpop.eup %1832  ;;  %1838 = vrcp.f32 %v988_v61 }
 0x472   : > { %1153 = vxpose.xlu0.b32.start [1/16] (narrow) %v1137_v4, 64  ;;  %v1138_v11 = vmul.f32 %v1813_v6, %v1387_v47  ;;  %v1835_v0 = vpop.eup %1834 }
 0x473   : > { %v1406_v49 = vpop.f32.mrb[12].mxu1  ;;  %v991_v2 = vpop.xlane.xlu1 %990 }
 0x474   : > { %v1407_v51 = vpop.f32.mrb[13].mxu1  ;;  %1840 = vrcp.f32 %v991_v2 }
 0x475   : > { %v1408_v34 = vadd.f32 %v1407_v51, %v1406_v49  ;;  %v1409_v13 = vpop.f32.mrb[14].mxu1  ;;  %v1198_v49 = vstv %s1197_s6  ;;  %s1872_s6 = scalar_lea.vmem %s2497_s28, 1024 }
 0x476   : > { %v1410_v19 = vpop.f32.mrb[15].mxu1  ;;  %1154 = vxpose.xlu0.b32.cont [2/16] (narrow) %v1138_v11, 64  ;;  %v1189_v11 = vld [vmem:[%s2472_s20] sm:$0xff]  ;;  %p1873_p7 = scmp.ne.s32.totalorder %s2497_s28, %s1872_s6 }
 0x477   : > { %v1411_v58 = vadd.f32 %v1410_v19, %v1409_v13  ;;  %v1145_v52 = vmul.f32 %v1827_v21, %v1408_v34 }
 0x478   : > { %p1874_p4 = pnand %p1873_p7, %p2579_p2 }
 0x479   : > { %v1146_v59 = vmul.f32 %v1829_v54, %v1411_v58 }
 0x47a   : > { %1155 = vxpose.xlu0.b32.cont [3/16] (narrow) %v1139_v9, 64  ;;  %v1837_v1 = vpop.eup %1836  ;;  %v1191_v9 = vld [vmem:[%s2472_s20 + $0x20] sm:$0xff]  ;;  %p1875_p0 = pneg %p1874_p4 }
 0x47b   : > { %v1412_v23 = vpop.f32.mrb[16].mxu1  ;;  %v1839_v47 = vpop.eup %1838 }
 0x47c   : > { %v1413_v53 = vpop.f32.mrb[17].mxu1 }
 0x47d   : > { %v1414_v10 = vadd.f32 %v1413_v53, %v1412_v23  ;;  %v1415_v55 = vpop.f32.mrb[18].mxu1 }
 0x47e   : > { %v1416_v12 = vpop.f32.mrb[19].mxu1  ;;  %1156 = vxpose.xlu0.b32.cont [4/16] (narrow) %v1140_v25, 64  ;;  %v1841_v48 = vpop.eup %1840  ;;  %v1192_v25 = vld [vmem:[%s2472_s20 + $0x30] sm:$0xff] }
 0x47f   : > { %v1417_v56 = vadd.f32 %v1416_v12, %v1415_v55  ;;  %v1147_v60 = vmul.f32 %v1831_v24, %v1414_v10 }
 0x481   : > { %v1148_v63 = vmul.f32 %v1833_v62, %v1417_v56 }
 0x482   : > { %1157 = vxpose.xlu0.b32.cont [5/16] (narrow) %v1141_v57, 64  ;;  %v1194_v57 = vld [vmem:[%s2472_s20 + $0x50] sm:$0xff] }
 0x483   : > { %v1418_v28 = vpop.f32.mrb[20].mxu1 }
 0x484   : > { %v1419_v32 = vpop.f32.mrb[21].mxu1 }
 0x485   : > { %v1420_v14 = vadd.f32 %v1419_v32, %v1418_v28  ;;  %v1421_v15 = vpop.f32.mrb[22].mxu1 }
 0x486   : > { %v1422_v36 = vpop.f32.mrb[23].mxu1  ;;  %1158 = vxpose.xlu0.b32.cont [6/16] (narrow) %v1142_v30, 64  ;;  %v1195_v30 = vld [vmem:[%s2472_s20 + $0x60] sm:$0xff]  ;;  %s1878_s20 = scalar_lea.vmem %s1877_s16, 2048 }
 0x487   : > { %v1423_v16 = vadd.f32 %v1422_v36, %v1421_v15  ;;  %v1149_v3 = vmul.f32 %v1835_v0, %v1420_v14  ;;  %p1880_p6 = scmp.lt.s32.totalorder %s1878_s20, %s1872_s6 }
 0x489   : > { %v1150_v5 = vmul.f32 %v1837_v1, %v1423_v16  ;;  %p1881_p9 = por %p1880_p6, %p1879_p1 }
 0x48a   : > { %1159 = vxpose.xlu0.b32.cont [7/16] (narrow) %v1143_v18, 64 }
 0x48b   : > { %v1424_v44 = vpop.f32.mrb[24].mxu1  ;;  %p1882_p3 = pnand %p1881_p9, %p1875_p0 }
 0x48c   : > { %v1425_v39 = vpop.f32.mrb[25].mxu1 }
 0x48d   : > { %v1426_v45 = vadd.f32 %v1425_v39, %v1424_v44  ;;  %v1427_v46 = vpop.f32.mrb[26].mxu1 }
 0x48e   : > { %v1428_v20 = vpop.f32.mrb[27].mxu1  ;;  %1160 = vxpose.xlu0.b32.cont [8/16] (narrow) %v1144_v37, 64 }
 0x48f   : > { %v1429_v41 = vadd.f32 %v1428_v20, %v1427_v46  ;;  %v1151_v4 = vmul.f32 %v1839_v47, %v1426_v45 }
 0x491   : > { %v1152_v6 = vmul.f32 %v1841_v48, %v1429_v41 }
 0x492   : > { %1161 = vxpose.xlu0.b32.cont [9/16] (narrow) %v1145_v52, 64 }
 0x496   : > { %1162 = vxpose.xlu0.b32.cont [10/16] (narrow) %v1146_v59, 64 }
 0x49a   : > { %1163 = vxpose.xlu0.b32.cont [11/16] (narrow) %v1147_v60, 64 }
 0x49e   : > { %1164 = vxpose.xlu0.b32.cont [12/16] (narrow) %v1148_v63, 64 }
 0x4a2   : > { %1165 = vxpose.xlu0.b32.cont [13/16] (narrow) %v1149_v3, 64 }
 0x4a6   : > { %1166 = vxpose.xlu0.b32.cont [14/16] (narrow) %v1150_v5, 64 }
 0x4aa   : > { %1167 = vxpose.xlu0.b32.cont [15/16] (narrow) %v1151_v4, 64 }
 0x4ae   : > { %1168 = vxpose.xlu0.b32.end [16/16] (narrow) %v1152_v6, 64 }
 0x4f2   : > { %v1169_v51 = vpop.trf.xlu0 }
 0x4f3   : > { %v1199_v34 = vmul.f32 %v1198_v49, %v1169_v51 }
 0x4f5   : > { %v1207_v13 = vadd.f32 %v1199_v34, %v1189_v11 }
 0x4f6   : > { %v1170_v19 = vpop.trf.xlu0 }
 0x4f7   : > { %1215 = vst [vmem:[%s2189_s11] sm:$0xff] %v1207_v13  ;;  %v1200_v8 = vmul.f32 %v1198_v49, %v1170_v19 }
 0x4f9   : > { %v1208_v58 = vadd.f32 %v1200_v8, %v1190_v17 }
 0x4fa   : > { %v1171_v7 = vpop.trf.xlu0 }
 0x4fb   : > { %1216 = vst [vmem:[%s2189_s11 + $0x8] sm:$0xff] %v1208_v58  ;;  %v1201_v27 = vmul.f32 %v1198_v49, %v1171_v7 }
 0x4fd   : > { %v1209_v23 = vadd.f32 %v1201_v27, %v1191_v9 }
 0x4fe   : > { %v1172_v53 = vpop.trf.xlu0 }
 0x4ff   : > { %1217 = vst [vmem:[%s2189_s11 + $0x10] sm:$0xff] %v1209_v23  ;;  %v1202_v10 = vmul.f32 %v1198_v49, %v1172_v53 }
 0x501   : > { %v1210_v55 = vadd.f32 %v1202_v10, %v1192_v25 }
 0x502   : > { %v1173_v12 = vpop.trf.xlu0 }
 0x503   : > { %1218 = vst [vmem:[%s2189_s11 + $0x18] sm:$0xff] %v1210_v55  ;;  %v1203_v31 = vmul.f32 %v1198_v49, %v1173_v12 }
 0x505   : > { %v1211_v56 = vadd.f32 %v1203_v31, %v1193_v29 }
 0x506   : > { %v1174_v33 = vpop.trf.xlu0 }
 0x507   : > { %1219 = vst [vmem:[%s2189_s11 + $0x20] sm:$0xff] %v1211_v56  ;;  %v1204_v26 = vmul.f32 %v1198_v49, %v1174_v33 }
 0x509   : > { %v1212_v28 = vadd.f32 %v1204_v26, %v1194_v57 }
 0x50a   : > { %v1175_v32 = vpop.trf.xlu0 }
 0x50b   : > { %1220 = vst [vmem:[%s2189_s11 + $0x28] sm:$0xff] %v1212_v28  ;;  %v1205_v14 = vmul.f32 %v1198_v49, %v1175_v32 }
 0x50d   : > { %v1213_v15 = vadd.f32 %v1205_v14, %v1195_v30 }
 0x50e   : > { %v1176_v36 = vpop.trf.xlu0 }
 0x50f   : > { %1221 = vst [vmem:[%s2189_s11 + $0x30] sm:$0xff] %v1213_v15  ;;  %v1206_v38 = vmul.f32 %v1198_v49, %v1176_v36 }
 0x511   : > { %v1214_v16 = vadd.f32 %v1206_v38, %v1196_v35 }
 0x513   : > { %1222 = vst [vmem:[%s2189_s11 + $0x38] sm:$0xff] %v1214_v16 }
 0x514   : > { %1885 = shalt.err (!%p1882_p3)
}
 0x515   : > { %s1886_s11 = scalar_lea.hbm %s2495_s10, 1024  ;;  %s1890_s9 = scalar_lea.hbm %s2567_s4, 4096 }
 0x516   : > { %p1887_p11 = scmp.ne.s32.totalorder %s2495_s10, %s1886_s11  ;;  %p1891_p8 = scmp.lt.u32.totalorder %s2495_s10, %s2567_s4 }
 0x517   : > { %p1892_p10 = scmp.lt.u32.totalorder %s1890_s9, %s1886_s11  ;;  %p1894_p7 = scmp.lt.u32.totalorder %s1886_s11, %s2495_s10 }
 0x518   : > { %p1888_p13 = pnand %p1887_p11, %p2579_p2 }
 0x519   : > { %p1893_p12 = por %p1892_p10, %p1891_p8 }
 0x51a   : > { %p1889_p5 = pneg %p1888_p13 }
 0x51b   : > { %p1895_p4 = por %p1894_p7, %p1893_p12 }
 0x51d   : > { %p1896_p0 = pnand %p1895_p4, %p1889_p5 }
 0x51f   : > { %1899 = shalt.err (!%p1896_p0)
}
 0x520   : > { %s2002_s23 = smov 128   ;;  %s2003_s6 = smov 256  }
 0x521   : > { %s2004_s5 = smov 8  }
 0x522   : > { %1456 = dma.vmem_to_hbm [thread:$0]  (%p2579_p2), %s2497_s28, 1024, %s2495_s10, %s2502_s27, %s2002_s23, %s2003_s6, %s2004_s5  }
 0x523 PF: > { %p1467_p1 = scmp.ge.s32.totalorder %s1994_s26, 2  ;;  %s1253_s16 = sand.u32 1, %s1954_s17  }
 0x524   : > { %p2580_p6 = scmp.ne.s32.totalorder %s2575_s15, 0  ;;  %s1254_s20 = scalar_lea.sflag [#allocation8], %s1253_s16 }
 0x526   : > { %p1463_p9 = pnand %p1467_p1, %p2580_p6 }
 0x528   : > { %1949 = dma.done.wait (!%p1463_p9), %s1254_s20, 1024  }
 0x529   : > { %1951 = vsyncadd (!%p1463_p9), %s1254_s20, 4294966272  ;;  %s21_s26 = sadd.s32 1, %s1994_s26   ;;  %s2581_s12 = sld [smem:[#allocation12_spill]] }
 0x52a   : > { %p18_p3 = scmp.ge.s32.totalorder %s21_s26, 6   ;;  %s2582_s17 = smov %s1958_s18 }
 0x52b   : > { %s2583_s18 = smov %s1962_s19  ;;  %s2584_s19 = smov %s2123_s14 }
 0x52c   : > { %s2585_s20 = smov %s1970_s21  ;;  %s2586_s21 = smov %s1974_s22 }
 0x52d   : > { %s2587_s22 = smov %s2120_s13  ;;  %s2588_s23 = smov %s1986_s3 }
 0x52e   : > { %s2589_s24 = smov %s1990_s25  ;;  %s2590_s3 = smov %s2593_s29 }
 0x52f   : > { %s2591_s25 = smov %s2581_s12  ;;  %20 = sbr.rel (!%p18_p3) target bundleno = 11 (0xb), region = 87 }
 0x536   :  { %1259 = vsyncpa [#allocation7], 1 }
 0x537   :  { %1261 = vsyncpa [#allocation7 + $0x1], 1 }
 0x538   :  { %1262 = vsyncpa [#allocation8], 1 }
 0x539   :  { %1264 = vsyncpa [#allocation8 + $0x1], 1 }

</bundles_post_ra>
